<compile_context>
chip_gen: v6e
topology: v6e:2x2x1
jax: 0.10.0
libtpu: 0.0.40
codegen_flags: <defaults>
</compile_context>

<pallas_src>
import numpy as np
import jax
import jax.numpy as jnp
from jax.experimental import pallas as pl
from jax.experimental.pallas import tpu as pltpu


_VMEM = pl.BlockSpec(memory_space=pltpu.MemorySpace.VMEM)
_LANES = 128


def _round_up(v, m):
    return ((v + m - 1) // m) * m


# ----------------------- static selector / weight builders -------------------

def _conv_tap_gather(N, Hin, Win, rows_in, k, pad, Hp, Wp):
    """Static 0/1 selector for one conv(stride 1)+ReLU+maxpool(2) stage.

    Rows enumerate (kernel tap j, 2x2 pool position p, pooled output q); each
    (j, p) group is padded to Gp = round_up(N*Hp*Wp, 8) sublanes.  Columns
    enumerate the NHW-flattened rows of the previous activation.  Out-of-bounds
    taps (zero padding) and row-padding slots are all-zero rows.
    """
    Gp = _round_up(N * Hp * Wp, 8)
    R = 4 * Gp
    S = np.zeros((k * k * R, rows_in), np.float32)
    for kh in range(k):
        for kw in range(k):
            j = kh * k + kw
            for pr in range(2):
                for pc in range(2):
                    p = pr * 2 + pc
                    for n in range(N):
                        for hp in range(Hp):
                            for wp in range(Wp):
                                q = (n * Hp + hp) * Wp + wp
                                h = 2 * hp + pr + kh - pad
                                w = 2 * wp + pc + kw - pad
                                if 0 <= h < Hin and 0 <= w < Win:
                                    S[j * R + p * Gp + q,
                                      (n * Hin + h) * Win + w] = 1.0
    return S, Gp, R


def _tap_stack(w, cin_pad):
    """Torch (Cout, Cin, k, k) conv weight -> (k*k*cin_pad, Cout): per-tap
    (Cin, Cout) blocks stacked in the same (kh, kw) order as the selector rows.
    Cin is zero-padded to cin_pad so every in-kernel slice stays 8-aligned."""
    cout, cin, k, _ = w.shape
    blocks = []
    for kh in range(k):
        for kw in range(k):
            blk = np.zeros((cin_pad, cout), np.float32)
            blk[:cin, :] = np.asarray(w[:, :, kh, kw]).T
            blocks.append(blk)
    return np.concatenate(blocks, axis=0)


# ------------------------- one-time prep + fused kernel ----------------------

def build_net(params, N):
    """Returns (forward_fn, buffers).  All awkward indexing (im2col, zero
    padding, stride-2 pool grouping, spatial flatten) is baked into static
    packs here; the kernel body is nothing but small dense matmuls + max/relu."""
    CIN_PAD = 32   # stage-1 Cin (20) padded so every tap slice is 8-aligned

    # ---- static conv-tap + pool selectors, one per stage ----
    s1, g1, r1 = _conv_tap_gather(N, 8, 8, N * 64, 3, 0, 3, 3)  # 8x8 ->6x6->3x3
    s2, g2, r2 = _conv_tap_gather(N, 3, 3, g1,     2, 1, 2, 2)  # 3x3 ->4x4->2x2
    s3, g3, r3 = _conv_tap_gather(N, 2, 2, g2,     2, 1, 1, 1)  # 2x2 ->3x3->1x1

    sel_cols = _round_up(max(N * 64, g1, g2), _LANES)
    o_s1, o_s2, o_s3 = 0, s1.shape[0], s1.shape[0] + s2.shape[0]
    sel = np.zeros((o_s3 + s3.shape[0], sel_cols), np.float32)
    for off, s in ((o_s1, s1), (o_s2, s2), (o_s3, s3)):
        sel[off:off + s.shape[0], :s.shape[1]] = s

    # ---- per-tap weight stacks packed into one lane-dense buffer ----
    w1s = _tap_stack(params["w1"], CIN_PAD)            # (9*32, 32)
    w2s = _tap_stack(params["w2"], 32)                  # (4*32, 64)
    w3s = _tap_stack(params["w3"], 64)                  # (4*64, 128)
    wfc = np.zeros((128, _LANES), np.float32)           # fc weights, lane-dense
    wfc[:, :10] = np.asarray(params["wfc"]).T
    o_w1 = 0
    o_w2 = o_w1 + w1s.shape[0]
    o_w3 = o_w2 + w2s.shape[0]
    o_wf = o_w3 + w3s.shape[0]
    wpack = np.zeros((o_wf + wfc.shape[0], _LANES), np.float32)
    for off, w in ((o_w1, w1s), (o_w2, w2s), (o_w3, w3s), (o_wf, wfc)):
        wpack[off:off + w.shape[0], :w.shape[1]] = w

    # ---- biases, one per 8-aligned sublane row ----
    bpack = np.zeros((32, _LANES), np.float32)
    bpack[0, :32] = np.asarray(params["b1"])
    bpack[8, :64] = np.asarray(params["b2"])
    bpack[16, :128] = np.asarray(params["b3"])
    bpack[24, :10] = np.asarray(params["bfc"])

    stages = (
        dict(o_s=o_s1, o_w=o_w1, b_row=0,  kk=9, r=r1, gp=g1,
             cin=CIN_PAD, cout=32,  rows_prev=N * 64),
        dict(o_s=o_s2, o_w=o_w2, b_row=8,  kk=4, r=r2, gp=g2,
             cin=32,      cout=64,  rows_prev=g1),
        dict(o_s=o_s3, o_w=o_w3, b_row=16, kk=4, r=r3, gp=g3,
             cin=64,      cout=128, rows_prev=g2),
    )
    fc = dict(o_w=o_wf, rows=128, b_row=24)
    out_rows = g3                       # padded pooled-row count after stage 3

    def kernel(x_ref, sel_ref, w_ref, b_ref, o_ref):
        f32 = jnp.float32
        a = x_ref[...]                                           # (N*64, 32)
        for st in stages:
            acc = None
            for j in range(st["kk"]):
                # Narrow weight matmul first, then the 0/1 gather/pool selector.
                wj = w_ref[st["o_w"] + j * st["cin"]:
                           st["o_w"] + (j + 1) * st["cin"], 0:st["cout"]]
                sj = sel_ref[st["o_s"] + j * st["r"]:
                             st["o_s"] + (j + 1) * st["r"], 0:st["rows_prev"]]
                v = jnp.dot(a, wj, preferred_element_type=f32)   # (rows_prev, cout)
                t = jnp.dot(sj, v, preferred_element_type=f32)   # (4*gp, cout)
                acc = t if acc is None else acc + t
            gp = st["gp"]
            # Max over the 4 pool-position groups, then bias + ReLU once
            # (exact: max/relu commute with the shared bias).
            m = jnp.maximum(jnp.maximum(acc[0 * gp:1 * gp], acc[1 * gp:2 * gp]),
                            jnp.maximum(acc[2 * gp:3 * gp], acc[3 * gp:4 * gp]))
            b = b_ref[st["b_row"]:st["b_row"] + 1, 0:st["cout"]]
            # NOTE: padded rows (>= N*Hp*Wp) of `a` hold relu(bias); the next
            # stage's selector has all-zero columns there and the final out[:N]
            # slice drops them, so this is benign by construction.
            a = jnp.maximum(m + b, 0.0)                          # (gp, cout)
        wf = w_ref[fc["o_w"]:fc["o_w"] + fc["rows"], :]          # (128, 128)
        bf = b_ref[fc["b_row"]:fc["b_row"] + 1, :]               # (1, 128)
        o_ref[...] = jnp.dot(a, wf, preferred_element_type=f32) + bf  # lane-dense

    bufs = {"sel": jnp.asarray(sel), "w": jnp.asarray(wpack), "b": jnp.asarray(bpack)}

    def forward(x_nchw, bufs):
        assert x_nchw.shape == (N, 20, 8, 8), (
            f"prepared for batch {N} / shape (N,20,8,8); got {x_nchw.shape}")
        # Only per-forward wrapper glue left: NCHW -> (N*H*W, Cin) rows + pad.
        x = jnp.transpose(x_nchw, (0, 2, 3, 1)).reshape(N * 64, 20)
        x = jnp.pad(x.astype(jnp.float32), ((0, 0), (0, CIN_PAD - 20)))
        out = pl.pallas_call(
            kernel,
            out_shape=jax.ShapeDtypeStruct((out_rows, _LANES), jnp.float32),
            in_specs=[_VMEM] * 4,
            out_specs=_VMEM,
        )(x, bufs["sel"], bufs["w"], bufs["b"])
        return out[:N, :10]

    return forward, bufs


# --------------------------- pure-JAX reference -------------------------------

def net_forward_ref(x_nchw, params):
    def stage(x, w, b, pad):
        y = jax.lax.conv_general_dilated(
            x, w, window_strides=(1, 1), padding=[(pad, pad), (pad, pad)],
            dimension_numbers=("NCHW", "OIHW", "NCHW"))
        y = jnp.maximum(y + b.reshape(1, -1, 1, 1), 0.0)
        N, C, H, W = y.shape
        Hp, Wp = H // 2, W // 2
        y = y[:, :, :2 * Hp, :2 * Wp].reshape(N, C, Hp, 2, Wp, 2).max(axis=(3, 5))
        return y

    x = x_nchw.astype(jnp.float32)
    x = stage(x, params["w1"], params["b1"], 0)
    x = stage(x, params["w2"], params["b2"], 1)
    x = stage(x, params["w3"], params["b3"], 1)
    x = x.reshape(x.shape[0], -1)
    return x @ params["wfc"].T + params["bfc"]


# ---------------------------------- main --------------------------------------

def make_params(key):
    ks = jax.random.split(key, 8)
    s = 0.1
    return {
        "w1": s * jax.random.normal(ks[0], (32, 20, 3, 3), jnp.float32),
        "b1": s * jax.random.normal(ks[1], (32,), jnp.float32),
        "w2": s * jax.random.normal(ks[2], (64, 32, 2, 2), jnp.float32),
        "b2": s * jax.random.normal(ks[3], (64,), jnp.float32),
        "w3": s * jax.random.normal(ks[4], (128, 64, 2, 2), jnp.float32),
        "b3": s * jax.random.normal(ks[5], (128,), jnp.float32),
        "wfc": s * jax.random.normal(ks[6], (10, 128), jnp.float32),
        "bfc": s * jax.random.normal(ks[7], (10,), jnp.float32),
    }


if __name__ == "__main__":
    key = jax.random.PRNGKey(0)
    pkey, xkey = jax.random.split(key)
    params = make_params(pkey)

    # Spatial size 8 is the smallest size that leaves a 1x1x128 feature map
    # before fc1 (matching Linear(128, 10)).
    x = jax.random.normal(xkey, (2, 20, 8, 8), jnp.float32)

    forward, bufs = build_net(params, N=x.shape[0])
    logits = jax.block_until_ready(jax.jit(forward)(x, bufs))

    ref = jax.block_until_ready(net_forward_ref(x, params))
    assert logits.shape == (2, 10)
    err = jnp.max(jnp.abs(logits - ref))
    assert jnp.allclose(logits, ref, rtol=1e-4, atol=1e-4), f"mismatch: max abs err = {err}"

    print("KERNEL_OK")
</pallas_src>

<mosaic_0001>
module attributes {stable_mosaic.version = 11 : i64} {
  func.func @kernel(%arg0: memref<128x32xf32, #tpu.memory_space<vmem>>, %arg1: memref<1120x128xf32, #tpu.memory_space<vmem>>, %arg2: memref<800x128xf32, #tpu.memory_space<vmem>>, %arg3: memref<32x128xf32, #tpu.memory_space<vmem>>, %arg4: memref<8x128xf32, #tpu.memory_space<vmem>>) attributes {dimension_semantics = [], scalar_prefetch = 0 : i64, scratch_operands = 0 : i64, tpu.core_type = #tpu.core_type<tc>} {
    %c0 = arith.constant 0 : index
    %c0_0 = arith.constant 0 : index
    %0 = vector.load %arg0[%c0, %c0_0] : memref<128x32xf32, #tpu.memory_space<vmem>>, vector<128x32xf32>
    %c0_1 = arith.constant 0 : index
    %c0_2 = arith.constant 0 : index
    %1 = vector.load %arg2[%c0_1, %c0_2] : memref<800x128xf32, #tpu.memory_space<vmem>>, vector<32x32xf32>
    %c0_3 = arith.constant 0 : index
    %c0_4 = arith.constant 0 : index
    %2 = vector.load %arg1[%c0_3, %c0_4] : memref<1120x128xf32, #tpu.memory_space<vmem>>, vector<96x128xf32>
    %cst = arith.constant dense<0.000000e+00> : vector<128x32xf32>
    %3 = tpu.matmul %0, %1, %cst {dimension_numbers = #tpu.dot_dimension_numbers<[1], [0], [0], [1], [0, 0, 1, 1], [], []>} : vector<128x32xf32>, vector<32x32xf32>, vector<128x32xf32> -> vector<128x32xf32>
    %cst_5 = arith.constant dense<0.000000e+00> : vector<96x32xf32>
    %4 = tpu.matmul %2, %3, %cst_5 {dimension_numbers = #tpu.dot_dimension_numbers<[1], [0], [0], [1], [0, 0, 1, 1], [], []>} : vector<96x128xf32>, vector<128x32xf32>, vector<96x32xf32> -> vector<96x32xf32>
    %c32 = arith.constant 32 : index
    %c0_6 = arith.constant 0 : index
    %5 = vector.load %arg2[%c32, %c0_6] : memref<800x128xf32, #tpu.memory_space<vmem>>, vector<32x32xf32>
    %c96 = arith.constant 96 : index
    %c0_7 = arith.constant 0 : index
    %6 = vector.load %arg1[%c96, %c0_7] : memref<1120x128xf32, #tpu.memory_space<vmem>>, vector<96x128xf32>
    %cst_8 = arith.constant dense<0.000000e+00> : vector<128x32xf32>
    %7 = tpu.matmul %0, %5, %cst_8 {dimension_numbers = #tpu.dot_dimension_numbers<[1], [0], [0], [1], [0, 0, 1, 1], [], []>} : vector<128x32xf32>, vector<32x32xf32>, vector<128x32xf32> -> vector<128x32xf32>
    %cst_9 = arith.constant dense<0.000000e+00> : vector<96x32xf32>
    %8 = tpu.matmul %6, %7, %cst_9 {dimension_numbers = #tpu.dot_dimension_numbers<[1], [0], [0], [1], [0, 0, 1, 1], [], []>} : vector<96x128xf32>, vector<128x32xf32>, vector<96x32xf32> -> vector<96x32xf32>
    %9 = arith.addf %4, %8 : vector<96x32xf32>
    %c64 = arith.constant 64 : index
    %c0_10 = arith.constant 0 : index
    %10 = vector.load %arg2[%c64, %c0_10] : memref<800x128xf32, #tpu.memory_space<vmem>>, vector<32x32xf32>
    %c192 = arith.constant 192 : index
    %c0_11 = arith.constant 0 : index
    %11 = vector.load %arg1[%c192, %c0_11] : memref<1120x128xf32, #tpu.memory_space<vmem>>, vector<96x128xf32>
    %cst_12 = arith.constant dense<0.000000e+00> : vector<128x32xf32>
    %12 = tpu.matmul %0, %10, %cst_12 {dimension_numbers = #tpu.dot_dimension_numbers<[1], [0], [0], [1], [0, 0, 1, 1], [], []>} : vector<128x32xf32>, vector<32x32xf32>, vector<128x32xf32> -> vector<128x32xf32>
    %cst_13 = arith.constant dense<0.000000e+00> : vector<96x32xf32>
    %13 = tpu.matmul %11, %12, %cst_13 {dimension_numbers = #tpu.dot_dimension_numbers<[1], [0], [0], [1], [0, 0, 1, 1], [], []>} : vector<96x128xf32>, vector<128x32xf32>, vector<96x32xf32> -> vector<96x32xf32>
    %14 = arith.addf %9, %13 : vector<96x32xf32>
    %c96_14 = arith.constant 96 : index
    %c0_15 = arith.constant 0 : index
    %15 = vector.load %arg2[%c96_14, %c0_15] : memref<800x128xf32, #tpu.memory_space<vmem>>, vector<32x32xf32>
    %c288 = arith.constant 288 : index
    %c0_16 = arith.constant 0 : index
    %16 = vector.load %arg1[%c288, %c0_16] : memref<1120x128xf32, #tpu.memory_space<vmem>>, vector<96x128xf32>
    %cst_17 = arith.constant dense<0.000000e+00> : vector<128x32xf32>
    %17 = tpu.matmul %0, %15, %cst_17 {dimension_numbers = #tpu.dot_dimension_numbers<[1], [0], [0], [1], [0, 0, 1, 1], [], []>} : vector<128x32xf32>, vector<32x32xf32>, vector<128x32xf32> -> vector<128x32xf32>
    %cst_18 = arith.constant dense<0.000000e+00> : vector<96x32xf32>
    %18 = tpu.matmul %16, %17, %cst_18 {dimension_numbers = #tpu.dot_dimension_numbers<[1], [0], [0], [1], [0, 0, 1, 1], [], []>} : vector<96x128xf32>, vector<128x32xf32>, vector<96x32xf32> -> vector<96x32xf32>
    %19 = arith.addf %14, %18 : vector<96x32xf32>
    %c128 = arith.constant 128 : index
    %c0_19 = arith.constant 0 : index
    %20 = vector.load %arg2[%c128, %c0_19] : memref<800x128xf32, #tpu.memory_space<vmem>>, vector<32x32xf32>
    %c384 = arith.constant 384 : index
    %c0_20 = arith.constant 0 : index
    %21 = vector.load %arg1[%c384, %c0_20] : memref<1120x128xf32, #tpu.memory_space<vmem>>, vector<96x128xf32>
    %cst_21 = arith.constant dense<0.000000e+00> : vector<128x32xf32>
    %22 = tpu.matmul %0, %20, %cst_21 {dimension_numbers = #tpu.dot_dimension_numbers<[1], [0], [0], [1], [0, 0, 1, 1], [], []>} : vector<128x32xf32>, vector<32x32xf32>, vector<128x32xf32> -> vector<128x32xf32>
    %cst_22 = arith.constant dense<0.000000e+00> : vector<96x32xf32>
    %23 = tpu.matmul %21, %22, %cst_22 {dimension_numbers = #tpu.dot_dimension_numbers<[1], [0], [0], [1], [0, 0, 1, 1], [], []>} : vector<96x128xf32>, vector<128x32xf32>, vector<96x32xf32> -> vector<96x32xf32>
    %24 = arith.addf %19, %23 : vector<96x32xf32>
    %c160 = arith.constant 160 : index
    %c0_23 = arith.constant 0 : index
    %25 = vector.load %arg2[%c160, %c0_23] : memref<800x128xf32, #tpu.memory_space<vmem>>, vector<32x32xf32>
    %c480 = arith.constant 480 : index
    %c0_24 = arith.constant 0 : index
    %26 = vector.load %arg1[%c480, %c0_24] : memref<1120x128xf32, #tpu.memory_space<vmem>>, vector<96x128xf32>
    %cst_25 = arith.constant dense<0.000000e+00> : vector<128x32xf32>
    %27 = tpu.matmul %0, %25, %cst_25 {dimension_numbers = #tpu.dot_dimension_numbers<[1], [0], [0], [1], [0, 0, 1, 1], [], []>} : vector<128x32xf32>, vector<32x32xf32>, vector<128x32xf32> -> vector<128x32xf32>
    %cst_26 = arith.constant dense<0.000000e+00> : vector<96x32xf32>
    %28 = tpu.matmul %26, %27, %cst_26 {dimension_numbers = #tpu.dot_dimension_numbers<[1], [0], [0], [1], [0, 0, 1, 1], [], []>} : vector<96x128xf32>, vector<128x32xf32>, vector<96x32xf32> -> vector<96x32xf32>
    %29 = arith.addf %24, %28 : vector<96x32xf32>
    %c192_27 = arith.constant 192 : index
    %c0_28 = arith.constant 0 : index
    %30 = vector.load %arg2[%c192_27, %c0_28] : memref<800x128xf32, #tpu.memory_space<vmem>>, vector<32x32xf32>
    %c576 = arith.constant 576 : index
    %c0_29 = arith.constant 0 : index
    %31 = vector.load %arg1[%c576, %c0_29] : memref<1120x128xf32, #tpu.memory_space<vmem>>, vector<96x128xf32>
    %cst_30 = arith.constant dense<0.000000e+00> : vector<128x32xf32>
    %32 = tpu.matmul %0, %30, %cst_30 {dimension_numbers = #tpu.dot_dimension_numbers<[1], [0], [0], [1], [0, 0, 1, 1], [], []>} : vector<128x32xf32>, vector<32x32xf32>, vector<128x32xf32> -> vector<128x32xf32>
    %cst_31 = arith.constant dense<0.000000e+00> : vector<96x32xf32>
    %33 = tpu.matmul %31, %32, %cst_31 {dimension_numbers = #tpu.dot_dimension_numbers<[1], [0], [0], [1], [0, 0, 1, 1], [], []>} : vector<96x128xf32>, vector<128x32xf32>, vector<96x32xf32> -> vector<96x32xf32>
    %34 = arith.addf %29, %33 : vector<96x32xf32>
    %c224 = arith.constant 224 : index
    %c0_32 = arith.constant 0 : index
    %35 = vector.load %arg2[%c224, %c0_32] : memref<800x128xf32, #tpu.memory_space<vmem>>, vector<32x32xf32>
    %c672 = arith.constant 672 : index
    %c0_33 = arith.constant 0 : index
    %36 = vector.load %arg1[%c672, %c0_33] : memref<1120x128xf32, #tpu.memory_space<vmem>>, vector<96x128xf32>
    %cst_34 = arith.constant dense<0.000000e+00> : vector<128x32xf32>
    %37 = tpu.matmul %0, %35, %cst_34 {dimension_numbers = #tpu.dot_dimension_numbers<[1], [0], [0], [1], [0, 0, 1, 1], [], []>} : vector<128x32xf32>, vector<32x32xf32>, vector<128x32xf32> -> vector<128x32xf32>
    %cst_35 = arith.constant dense<0.000000e+00> : vector<96x32xf32>
    %38 = tpu.matmul %36, %37, %cst_35 {dimension_numbers = #tpu.dot_dimension_numbers<[1], [0], [0], [1], [0, 0, 1, 1], [], []>} : vector<96x128xf32>, vector<128x32xf32>, vector<96x32xf32> -> vector<96x32xf32>
    %39 = arith.addf %34, %38 : vector<96x32xf32>
    %c256 = arith.constant 256 : index
    %c0_36 = arith.constant 0 : index
    %40 = vector.load %arg2[%c256, %c0_36] : memref<800x128xf32, #tpu.memory_space<vmem>>, vector<32x32xf32>
    %c768 = arith.constant 768 : index
    %c0_37 = arith.constant 0 : index
    %41 = vector.load %arg1[%c768, %c0_37] : memref<1120x128xf32, #tpu.memory_space<vmem>>, vector<96x128xf32>
    %cst_38 = arith.constant dense<0.000000e+00> : vector<128x32xf32>
    %42 = tpu.matmul %0, %40, %cst_38 {dimension_numbers = #tpu.dot_dimension_numbers<[1], [0], [0], [1], [0, 0, 1, 1], [], []>} : vector<128x32xf32>, vector<32x32xf32>, vector<128x32xf32> -> vector<128x32xf32>
    %cst_39 = arith.constant dense<0.000000e+00> : vector<96x32xf32>
    %43 = tpu.matmul %41, %42, %cst_39 {dimension_numbers = #tpu.dot_dimension_numbers<[1], [0], [0], [1], [0, 0, 1, 1], [], []>} : vector<96x128xf32>, vector<128x32xf32>, vector<96x32xf32> -> vector<96x32xf32>
    %44 = arith.addf %39, %43 : vector<96x32xf32>
    %45 = vector.extract_strided_slice %44 {offsets = [0, 0], sizes = [24, 32], strides = [1, 1]} : vector<96x32xf32> to vector<24x32xf32>
    %46 = vector.extract_strided_slice %44 {offsets = [24, 0], sizes = [24, 32], strides = [1, 1]} : vector<96x32xf32> to vector<24x32xf32>
    %47 = arith.maximumf %45, %46 : vector<24x32xf32>
    %48 = vector.extract_strided_slice %44 {offsets = [48, 0], sizes = [24, 32], strides = [1, 1]} : vector<96x32xf32> to vector<24x32xf32>
    %49 = vector.extract_strided_slice %44 {offsets = [72, 0], sizes = [24, 32], strides = [1, 1]} : vector<96x32xf32> to vector<24x32xf32>
    %50 = arith.maximumf %48, %49 : vector<24x32xf32>
    %51 = arith.maximumf %47, %50 : vector<24x32xf32>
    %c0_40 = arith.constant 0 : index
    %c0_41 = arith.constant 0 : index
    %52 = vector.load %arg3[%c0_40, %c0_41] : memref<32x128xf32, #tpu.memory_space<vmem>>, vector<1x32xf32>
    %53 = vector.broadcast %52 : vector<1x32xf32> to vector<24x32xf32>
    %54 = arith.addf %51, %53 : vector<24x32xf32>
    %cst_42 = arith.constant 0.000000e+00 : f32
    %55 = vector.broadcast %cst_42 : f32 to vector<24x32xf32>
    %56 = arith.maximumf %54, %55 : vector<24x32xf32>
    %c288_43 = arith.constant 288 : index
    %c0_44 = arith.constant 0 : index
    %57 = vector.load %arg2[%c288_43, %c0_44] : memref<800x128xf32, #tpu.memory_space<vmem>>, vector<32x64xf32>
    %c864 = arith.constant 864 : index
    %c0_45 = arith.constant 0 : index
    %58 = vector.load %arg1[%c864, %c0_45] : memref<1120x128xf32, #tpu.memory_space<vmem>>, vector<32x24xf32>
    %cst_46 = arith.constant dense<0.000000e+00> : vector<24x64xf32>
    %59 = tpu.matmul %56, %57, %cst_46 {dimension_numbers = #tpu.dot_dimension_numbers<[1], [0], [0], [1], [0, 0, 1, 1], [], []>} : vector<24x32xf32>, vector<32x64xf32>, vector<24x64xf32> -> vector<24x64xf32>
    %cst_47 = arith.constant dense<0.000000e+00> : vector<32x64xf32>
    %60 = tpu.matmul %58, %59, %cst_47 {dimension_numbers = #tpu.dot_dimension_numbers<[1], [0], [0], [1], [0, 0, 1, 1], [], []>} : vector<32x24xf32>, vector<24x64xf32>, vector<32x64xf32> -> vector<32x64xf32>
    %c320 = arith.constant 320 : index
    %c0_48 = arith.constant 0 : index
    %61 = vector.load %arg2[%c320, %c0_48] : memref<800x128xf32, #tpu.memory_space<vmem>>, vector<32x64xf32>
    %c896 = arith.constant 896 : index
    %c0_49 = arith.constant 0 : index
    %62 = vector.load %arg1[%c896, %c0_49] : memref<1120x128xf32, #tpu.memory_space<vmem>>, vector<32x24xf32>
    %cst_50 = arith.constant dense<0.000000e+00> : vector<24x64xf32>
    %63 = tpu.matmul %56, %61, %cst_50 {dimension_numbers = #tpu.dot_dimension_numbers<[1], [0], [0], [1], [0, 0, 1, 1], [], []>} : vector<24x32xf32>, vector<32x64xf32>, vector<24x64xf32> -> vector<24x64xf32>
    %cst_51 = arith.constant dense<0.000000e+00> : vector<32x64xf32>
    %64 = tpu.matmul %62, %63, %cst_51 {dimension_numbers = #tpu.dot_dimension_numbers<[1], [0], [0], [1], [0, 0, 1, 1], [], []>} : vector<32x24xf32>, vector<24x64xf32>, vector<32x64xf32> -> vector<32x64xf32>
    %65 = arith.addf %60, %64 : vector<32x64xf32>
    %c352 = arith.constant 352 : index
    %c0_52 = arith.constant 0 : index
    %66 = vector.load %arg2[%c352, %c0_52] : memref<800x128xf32, #tpu.memory_space<vmem>>, vector<32x64xf32>
    %c928 = arith.constant 928 : index
    %c0_53 = arith.constant 0 : index
    %67 = vector.load %arg1[%c928, %c0_53] : memref<1120x128xf32, #tpu.memory_space<vmem>>, vector<32x24xf32>
    %cst_54 = arith.constant dense<0.000000e+00> : vector<24x64xf32>
    %68 = tpu.matmul %56, %66, %cst_54 {dimension_numbers = #tpu.dot_dimension_numbers<[1], [0], [0], [1], [0, 0, 1, 1], [], []>} : vector<24x32xf32>, vector<32x64xf32>, vector<24x64xf32> -> vector<24x64xf32>
    %cst_55 = arith.constant dense<0.000000e+00> : vector<32x64xf32>
    %69 = tpu.matmul %67, %68, %cst_55 {dimension_numbers = #tpu.dot_dimension_numbers<[1], [0], [0], [1], [0, 0, 1, 1], [], []>} : vector<32x24xf32>, vector<24x64xf32>, vector<32x64xf32> -> vector<32x64xf32>
    %70 = arith.addf %65, %69 : vector<32x64xf32>
    %c384_56 = arith.constant 384 : index
    %c0_57 = arith.constant 0 : index
    %71 = vector.load %arg2[%c384_56, %c0_57] : memref<800x128xf32, #tpu.memory_space<vmem>>, vector<32x64xf32>
    %c960 = arith.constant 960 : index
    %c0_58 = arith.constant 0 : index
    %72 = vector.load %arg1[%c960, %c0_58] : memref<1120x128xf32, #tpu.memory_space<vmem>>, vector<32x24xf32>
    %cst_59 = arith.constant dense<0.000000e+00> : vector<24x64xf32>
    %73 = tpu.matmul %56, %71, %cst_59 {dimension_numbers = #tpu.dot_dimension_numbers<[1], [0], [0], [1], [0, 0, 1, 1], [], []>} : vector<24x32xf32>, vector<32x64xf32>, vector<24x64xf32> -> vector<24x64xf32>
    %cst_60 = arith.constant dense<0.000000e+00> : vector<32x64xf32>
    %74 = tpu.matmul %72, %73, %cst_60 {dimension_numbers = #tpu.dot_dimension_numbers<[1], [0], [0], [1], [0, 0, 1, 1], [], []>} : vector<32x24xf32>, vector<24x64xf32>, vector<32x64xf32> -> vector<32x64xf32>
    %75 = arith.addf %70, %74 : vector<32x64xf32>
    %76 = vector.extract_strided_slice %75 {offsets = [0, 0], sizes = [8, 64], strides = [1, 1]} : vector<32x64xf32> to vector<8x64xf32>
    %77 = vector.extract_strided_slice %75 {offsets = [8, 0], sizes = [8, 64], strides = [1, 1]} : vector<32x64xf32> to vector<8x64xf32>
    %78 = arith.maximumf %76, %77 : vector<8x64xf32>
    %79 = vector.extract_strided_slice %75 {offsets = [16, 0], sizes = [8, 64], strides = [1, 1]} : vector<32x64xf32> to vector<8x64xf32>
    %80 = vector.extract_strided_slice %75 {offsets = [24, 0], sizes = [8, 64], strides = [1, 1]} : vector<32x64xf32> to vector<8x64xf32>
    %81 = arith.maximumf %79, %80 : vector<8x64xf32>
    %82 = arith.maximumf %78, %81 : vector<8x64xf32>
    %c8 = arith.constant 8 : index
    %c0_61 = arith.constant 0 : index
    %83 = vector.load %arg3[%c8, %c0_61] : memref<32x128xf32, #tpu.memory_space<vmem>>, vector<1x64xf32>
    %84 = vector.broadcast %83 : vector<1x64xf32> to vector<8x64xf32>
    %85 = arith.addf %82, %84 : vector<8x64xf32>
    %cst_62 = arith.constant 0.000000e+00 : f32
    %86 = vector.broadcast %cst_62 : f32 to vector<8x64xf32>
    %87 = arith.maximumf %85, %86 : vector<8x64xf32>
    %c416 = arith.constant 416 : index
    %c0_63 = arith.constant 0 : index
    %88 = vector.load %arg2[%c416, %c0_63] : memref<800x128xf32, #tpu.memory_space<vmem>>, vector<64x128xf32>
    %c992 = arith.constant 992 : index
    %c0_64 = arith.constant 0 : index
    %89 = vector.load %arg1[%c992, %c0_64] : memref<1120x128xf32, #tpu.memory_space<vmem>>, vector<32x8xf32>
    %cst_65 = arith.constant dense<0.000000e+00> : vector<8x128xf32>
    %90 = tpu.matmul %87, %88, %cst_65 {dimension_numbers = #tpu.dot_dimension_numbers<[1], [0], [0], [1], [0, 0, 1, 1], [], []>} : vector<8x64xf32>, vector<64x128xf32>, vector<8x128xf32> -> vector<8x128xf32>
    %cst_66 = arith.constant dense<0.000000e+00> : vector<32x128xf32>
    %91 = tpu.matmul %89, %90, %cst_66 {dimension_numbers = #tpu.dot_dimension_numbers<[1], [0], [0], [1], [0, 0, 1, 1], [], []>} : vector<32x8xf32>, vector<8x128xf32>, vector<32x128xf32> -> vector<32x128xf32>
    %c480_67 = arith.constant 480 : index
    %c0_68 = arith.constant 0 : index
    %92 = vector.load %arg2[%c480_67, %c0_68] : memref<800x128xf32, #tpu.memory_space<vmem>>, vector<64x128xf32>
    %c1024 = arith.constant 1024 : index
    %c0_69 = arith.constant 0 : index
    %93 = vector.load %arg1[%c1024, %c0_69] : memref<1120x128xf32, #tpu.memory_space<vmem>>, vector<32x8xf32>
    %cst_70 = arith.constant dense<0.000000e+00> : vector<8x128xf32>
    %94 = tpu.matmul %87, %92, %cst_70 {dimension_numbers = #tpu.dot_dimension_numbers<[1], [0], [0], [1], [0, 0, 1, 1], [], []>} : vector<8x64xf32>, vector<64x128xf32>, vector<8x128xf32> -> vector<8x128xf32>
    %cst_71 = arith.constant dense<0.000000e+00> : vector<32x128xf32>
    %95 = tpu.matmul %93, %94, %cst_71 {dimension_numbers = #tpu.dot_dimension_numbers<[1], [0], [0], [1], [0, 0, 1, 1], [], []>} : vector<32x8xf32>, vector<8x128xf32>, vector<32x128xf32> -> vector<32x128xf32>
    %96 = arith.addf %91, %95 : vector<32x128xf32>
    %c544 = arith.constant 544 : index
    %c0_72 = arith.constant 0 : index
    %97 = vector.load %arg2[%c544, %c0_72] : memref<800x128xf32, #tpu.memory_space<vmem>>, vector<64x128xf32>
    %c1056 = arith.constant 1056 : index
    %c0_73 = arith.constant 0 : index
    %98 = vector.load %arg1[%c1056, %c0_73] : memref<1120x128xf32, #tpu.memory_space<vmem>>, vector<32x8xf32>
    %cst_74 = arith.constant dense<0.000000e+00> : vector<8x128xf32>
    %99 = tpu.matmul %87, %97, %cst_74 {dimension_numbers = #tpu.dot_dimension_numbers<[1], [0], [0], [1], [0, 0, 1, 1], [], []>} : vector<8x64xf32>, vector<64x128xf32>, vector<8x128xf32> -> vector<8x128xf32>
    %cst_75 = arith.constant dense<0.000000e+00> : vector<32x128xf32>
    %100 = tpu.matmul %98, %99, %cst_75 {dimension_numbers = #tpu.dot_dimension_numbers<[1], [0], [0], [1], [0, 0, 1, 1], [], []>} : vector<32x8xf32>, vector<8x128xf32>, vector<32x128xf32> -> vector<32x128xf32>
    %101 = arith.addf %96, %100 : vector<32x128xf32>
    %c608 = arith.constant 608 : index
    %c0_76 = arith.constant 0 : index
    %102 = vector.load %arg2[%c608, %c0_76] : memref<800x128xf32, #tpu.memory_space<vmem>>, vector<64x128xf32>
    %c1088 = arith.constant 1088 : index
    %c0_77 = arith.constant 0 : index
    %103 = vector.load %arg1[%c1088, %c0_77] : memref<1120x128xf32, #tpu.memory_space<vmem>>, vector<32x8xf32>
    %cst_78 = arith.constant dense<0.000000e+00> : vector<8x128xf32>
    %104 = tpu.matmul %87, %102, %cst_78 {dimension_numbers = #tpu.dot_dimension_numbers<[1], [0], [0], [1], [0, 0, 1, 1], [], []>} : vector<8x64xf32>, vector<64x128xf32>, vector<8x128xf32> -> vector<8x128xf32>
    %cst_79 = arith.constant dense<0.000000e+00> : vector<32x128xf32>
    %105 = tpu.matmul %103, %104, %cst_79 {dimension_numbers = #tpu.dot_dimension_numbers<[1], [0], [0], [1], [0, 0, 1, 1], [], []>} : vector<32x8xf32>, vector<8x128xf32>, vector<32x128xf32> -> vector<32x128xf32>
    %106 = arith.addf %101, %105 : vector<32x128xf32>
    %107 = vector.extract_strided_slice %106 {offsets = [0, 0], sizes = [8, 128], strides = [1, 1]} : vector<32x128xf32> to vector<8x128xf32>
    %108 = vector.extract_strided_slice %106 {offsets = [8, 0], sizes = [8, 128], strides = [1, 1]} : vector<32x128xf32> to vector<8x128xf32>
    %109 = arith.maximumf %107, %108 : vector<8x128xf32>
    %110 = vector.extract_strided_slice %106 {offsets = [16, 0], sizes = [8, 128], strides = [1, 1]} : vector<32x128xf32> to vector<8x128xf32>
    %111 = vector.extract_strided_slice %106 {offsets = [24, 0], sizes = [8, 128], strides = [1, 1]} : vector<32x128xf32> to vector<8x128xf32>
    %112 = arith.maximumf %110, %111 : vector<8x128xf32>
    %113 = arith.maximumf %109, %112 : vector<8x128xf32>
    %c16 = arith.constant 16 : index
    %c0_80 = arith.constant 0 : index
    %114 = vector.load %arg3[%c16, %c0_80] : memref<32x128xf32, #tpu.memory_space<vmem>>, vector<1x128xf32>
    %115 = vector.broadcast %114 : vector<1x128xf32> to vector<8x128xf32>
    %116 = arith.addf %113, %115 : vector<8x128xf32>
    %cst_81 = arith.constant 0.000000e+00 : f32
    %117 = vector.broadcast %cst_81 : f32 to vector<8x128xf32>
    %118 = arith.maximumf %116, %117 : vector<8x128xf32>
    %c672_82 = arith.constant 672 : index
    %c0_83 = arith.constant 0 : index
    %119 = vector.load %arg2[%c672_82, %c0_83] : memref<800x128xf32, #tpu.memory_space<vmem>>, vector<128x128xf32>
    %c24 = arith.constant 24 : index
    %c0_84 = arith.constant 0 : index
    %120 = vector.load %arg3[%c24, %c0_84] : memref<32x128xf32, #tpu.memory_space<vmem>>, vector<1x128xf32>
    %cst_85 = arith.constant dense<0.000000e+00> : vector<8x128xf32>
    %121 = tpu.matmul %118, %119, %cst_85 {dimension_numbers = #tpu.dot_dimension_numbers<[1], [0], [0], [1], [0, 0, 1, 1], [], []>} : vector<8x128xf32>, vector<128x128xf32>, vector<8x128xf32> -> vector<8x128xf32>
    %122 = vector.broadcast %120 : vector<1x128xf32> to vector<8x128xf32>
    %123 = arith.addf %121, %122 : vector<8x128xf32>
    %c0_86 = arith.constant 0 : index
    %c0_87 = arith.constant 0 : index
    %124 = vector.load %arg4[%c0_86, %c0_87] : memref<8x128xf32, #tpu.memory_space<vmem>>, vector<8x128xf32>
    tpu.vector_store %arg4[%c0_86, %c0_87], %123 {strides = array<i32>} : memref<8x128xf32, #tpu.memory_space<vmem>>, vector<8x128xf32>,
    return
  }
}

</mosaic_0001>

<bundles_post_ra>
// kernel: forward.1
= control target key start
LH: loop header
LB: loop body
LE: loop exit
PB: predicated region body
PF: predicated region fallthrough
CT: control target
= control target key end

     0   :  { %9 = vsyncpa [#allocation3], 0  ;;  %s7182_s0 = inlined_call_operand.vmem [shape: f32[128,32], index: 0, kind: input, shape index: {}]   ;;  %s7183_s1 = inlined_call_operand.hbm [shape: f32[1120,128], index: 1, kind: input, shape index: {}]   ;;  %s7184_s2 = inlined_call_operand.hbm [shape: f32[800,128], index: 2, kind: input, shape index: {}]   ;;  %s7185_s3 = inlined_call_operand.vmem [shape: f32[32,128], index: 3, kind: input, shape index: {}]   ;;  %s7186_s4 = inlined_call_operand.vmem [shape: f32[8,128], index: 4, kind: output, shape index: {}]  }
   0x1   :  { %10 = vsyncpa [#allocation5], 0  ;;  %s6229_s15 = smov [#allocation2]  }
   0x2   :  { %s18_s16 = sshll.u32 %s6229_s15, 4  ;;  %s19_s16 = int_to_ptr.vmem [resolvable:$true] %s18_s16 }
   0x3   :  { %s6193_s17 = scalar_lea.vmem %s19_s16, 17920  ;;  %p6198_p1 = scmp.lt.s32.totalorder %s19_s16, %s19_s16 }
   0x4   :  { %p6194_p0 = scmp.ne.s32.totalorder %s19_s16, %s6193_s17  ;;  %p6199_p2 = scmp.lt.s32.totalorder %s6193_s17, %s6193_s17 }
   0x6   :  { %p6200_p3 = por %p6199_p2, %p6198_p1 }
   0x8   :  { %p6201_p4 = pnand %p6200_p3, %p6194_p0 }
   0xa   :  { %6204 = shalt.err (!%p6201_p4)
}
   0xb   :  { %s6230_s18 = smov 128   ;;  %s6231_s19 = smov 8  }
   0xc   :  { %24 = dma.hbm_to_vmem [thread:$0]  %s7183_s1, 17920, %s19_s16, [#allocation3], %s6230_s18, %s6230_s18, %s6231_s19  }
   0xd   :  { %s6232_s22 = smov [#allocation4]  }
   0xe   :  { %s30_s23 = sshll.u32 %s6232_s22, 4  ;;  %s31_s23 = int_to_ptr.vmem [resolvable:$true] %s30_s23 }
   0xf   :  { %s6213_s24 = scalar_lea.vmem %s31_s23, 12800  ;;  %p6218_p6 = scmp.lt.s32.totalorder %s31_s23, %s31_s23 }
  0x10   :  { %p6214_p5 = scmp.ne.s32.totalorder %s31_s23, %s6213_s24  ;;  %p6219_p7 = scmp.lt.s32.totalorder %s6213_s24, %s6213_s24 }
  0x12   :  { %p6220_p8 = por %p6219_p7, %p6218_p6 }
  0x14   :  { %p6221_p9 = pnand %p6220_p8, %p6214_p5 }
  0x16   :  { %6224 = shalt.err (!%p6221_p9)
}
  0x17   :  { %36 = dma.hbm_to_vmem [thread:$0]  %s7184_s2, 12800, %s31_s23, [#allocation5], %s6230_s18, %s6230_s18, %s6231_s19  }
  0x18   :  { %6225 = dma.done.wait [#allocation3], 17920  }
  0x19   :  { %6226 = vsyncadd [#allocation3], 4294949376 }
  0x1a   :  { %6227 = dma.done.wait [#allocation5], 12800  }
  0x1b   :  { %6228 = vsyncadd [#allocation5], 4294954496  ;;  %v64_v0 = vld [vmem:[#allocation4 + $0x18] sm:$0xff]  ;;  %v63_v2 = vld [vmem:[#allocation4 + $0x10] sm:$0xff]  ;;  %vm77_vm0 = vcmask 261120   ;;  %vm6234_vm1 = vmmov 0  }
  0x1c   :  { %v274_v1 = vld [vmem:[#allocation4 + $0x38] sm:$0xff]  ;;  %5150 = vmatprep.subr.mxu0 %v64_v0  ;;  %v273_v3 = vld [vmem:[#allocation4 + $0x30] sm:$0xff]  ;;  %v62_v4 = vld [vmem:[#allocation4 + $0x8] sm:$0xff]  ;;  %vm2973_vm2 = vcmask 195584   ;;  %vm3568_vm3 = vcmask 523264   ;;  %vm3724_vm4 = vcmask 64512  }
  0x1d   :  { %5182 = vmatprep.subr.mxu1 %v274_v1  ;;  %5151 = vmatpush3.msra.mxu0 %v64_v0  ;;  %v272_v5 = vld [vmem:[#allocation4 + $0x28] sm:$0xff]  ;;  %v61_v6 = vld [vmem:[#allocation4] sm:$0xff]  ;;  %v6281_v10 = vld [vmem:[%s7182_s0 + $0x10] sm:$0xff] }
  0x1e   :  { %5183 = vmatpush3.msra.mxu1 %v274_v1  ;;  %5152 = vmatprep.subr.mxu0 %v63_v2  ;;  %v271_v7 = vld [vmem:[#allocation4 + $0x20] sm:$0xff]  ;;  %v6274_v9 = vld [vmem:[%s7182_s0 + $0x8] sm:$0xff]  ;;  %v6296_v11 = vld [vmem:[%s7182_s0 + $0x18] sm:$0xff] }
  0x1f   :  { %5184 = vmatprep.subr.mxu1 %v273_v3  ;;  %5153 = vmatpush3.msra.mxu0 %v63_v2  ;;  %v6269_v8 = vld [vmem:[%s7182_s0] sm:$0xff]  ;;  %v6314_v13 = vld [vmem:[%s7182_s0 + $0x28] sm:$0xff]  ;;  %v6319_v14 = vld [vmem:[%s7182_s0 + $0x30] sm:$0xff] }
  0x20   :  { %5185 = vmatpush3.msra.mxu1 %v273_v3  ;;  %5154 = vmatprep.subr.mxu0 %v62_v4  ;;  %v6301_v12 = vld [vmem:[%s7182_s0 + $0x20] sm:$0xff]  ;;  %v6332_v15 = vld [vmem:[%s7182_s0 + $0x38] sm:$0xff]  ;;  %v6350_v17 = vld [vmem:[%s7182_s0 + $0x48] sm:$0xff] }
  0x21   :  { %5186 = vmatprep.subr.mxu1 %v272_v5  ;;  %5155 = vmatpush3.msra.mxu0 %v62_v4  ;;  %v6337_v16 = vld [vmem:[%s7182_s0 + $0x40] sm:$0xff]  ;;  %v6355_v18 = vld [vmem:[%s7182_s0 + $0x50] sm:$0xff]  ;;  %v6368_v19 = vld [vmem:[%s7182_s0 + $0x58] sm:$0xff] }
  0x22   :  { %5187 = vmatpush3.msra.mxu1 %v272_v5  ;;  %5156 = vmatprep.subr.mxu0 %v61_v6  ;;  %v6373_v20 = vld [vmem:[%s7182_s0 + $0x60] sm:$0xff]  ;;  %v6386_v21 = vld [vmem:[%s7182_s0 + $0x68] sm:$0xff]  ;;  %v6391_v22 = vld [vmem:[%s7182_s0 + $0x70] sm:$0xff] }
  0x23   :  { %5188 = vmatprep.subr.mxu1 %v271_v7  ;;  %5157 = vmatpush3.msra.mxu0 %v61_v6  ;;  %v6404_v23 = vld [vmem:[%s7182_s0 + $0x78] sm:$0xff]  ;;  %v275_v24 = vld [vmem:[#allocation2 + $0x60] sm:$0xff]  ;;  %v276_v58 = vld [vmem:[#allocation2 + $0x68] sm:$0xff] }
  0x24   :  { %5158 = vmatprep.mubr.msk.f32.mxu0 %vm77_vm0, %v6269_v8  ;;  %5189 = vmatpush3.msra.mxu1 %v271_v7  ;;  %v65_v25 = vld [vmem:[#allocation2] sm:$0xff]  ;;  %v66_v59 = vld [vmem:[#allocation2 + $0x8] sm:$0xff]  ;;  %v277_v60 = vld [vmem:[#allocation2 + $0x70] sm:$0xff] }
  0x25   :  { %5190 = vmatprep.mubr.msk.f32.mxu1 %vm77_vm0, %v6269_v8  ;;  %5159 = vmatmul.mubr.msk.f32.vlgmr.msra.gmra.mxu0 %vm77_vm0, %v6274_v9  ;;  %v67_v61 = vld [vmem:[#allocation2 + $0x10] sm:$0xff]  ;;  %v685_v62 = vld [vmem:[#allocation4 + $0x58] sm:$0xff]  ;;  %v279_v1 = vld [vmem:[#allocation2 + $0x80] sm:$0xff] }
  0x26   :  { %5191 = vmatmul.mubr.msk.f32.vlgmr.msra.gmra.mxu1 %vm77_vm0, %v6274_v9  ;;  %5161 = vmatprep.mubr.msk.f32.mxu0 %vm77_vm0, %v6281_v10  ;;  %v278_v63 = vld [vmem:[#allocation2 + $0x78] sm:$0xff]  ;;  %v69_v2 = vld [vmem:[#allocation2 + $0x20] sm:$0xff]  ;;  %v684_v3 = vld [vmem:[#allocation4 + $0x50] sm:$0xff] }
  0x27   :  { %5193 = vmatprep.mubr.msk.f32.mxu1 %vm77_vm0, %v6281_v10  ;;  %v68_v0 = vld [vmem:[#allocation2 + $0x18] sm:$0xff]  ;;  %v280_v4 = vld [vmem:[#allocation2 + $0x88] sm:$0xff]  ;;  %v281_v6 = vld [vmem:[#allocation2 + $0x90] sm:$0xff] }
  0x28   :  { %v70_v5 = vld [vmem:[#allocation2 + $0x28] sm:$0xff]  ;;  %v71_v7 = vld [vmem:[#allocation2 + $0x30] sm:$0xff] }
  0x29   :  { %5162 = vmatmul.mubr.msk.f32.gmra.mxu0 %vm77_vm0, %v6296_v11 }
  0x2a   :  { %5194 = vmatmul.mubr.msk.f32.gmra.mxu1 %vm77_vm0, %v6296_v11  ;;  %5164 = vmatprep.mubr.msk.f32.mxu0 %vm77_vm0, %v6301_v12 }
  0x2b   :  { %5196 = vmatprep.mubr.msk.f32.mxu1 %vm77_vm0, %v6301_v12 }
  0x2d   :  { %5165 = vmatmul.mubr.msk.f32.gmra.mxu0 %vm77_vm0, %v6314_v13 }
  0x2e   :  { %5197 = vmatmul.mubr.msk.f32.gmra.mxu1 %vm77_vm0, %v6314_v13  ;;  %5167 = vmatprep.mubr.msk.f32.mxu0 %vm77_vm0, %v6319_v14 }
  0x2f   :  { %5199 = vmatprep.mubr.msk.f32.mxu1 %vm77_vm0, %v6319_v14 }
  0x31   :  { %5168 = vmatmul.mubr.msk.f32.gmra.mxu0 %vm77_vm0, %v6332_v15 }
  0x32   :  { %5200 = vmatmul.mubr.msk.f32.gmra.mxu1 %vm77_vm0, %v6332_v15  ;;  %5170 = vmatprep.mubr.msk.f32.mxu0 %vm77_vm0, %v6337_v16 }
  0x33   :  { %5202 = vmatprep.mubr.msk.f32.mxu1 %vm77_vm0, %v6337_v16 }
  0x35   :  { %5171 = vmatmul.mubr.msk.f32.gmra.mxu0 %vm77_vm0, %v6350_v17 }
  0x36   :  { %5203 = vmatmul.mubr.msk.f32.gmra.mxu1 %vm77_vm0, %v6350_v17  ;;  %5173 = vmatprep.mubr.msk.f32.mxu0 %vm77_vm0, %v6355_v18 }
  0x37   :  { %5205 = vmatprep.mubr.msk.f32.mxu1 %vm77_vm0, %v6355_v18 }
  0x39   :  { %5174 = vmatmul.mubr.msk.f32.gmra.mxu0 %vm77_vm0, %v6368_v19 }
  0x3a   :  { %5206 = vmatmul.mubr.msk.f32.gmra.mxu1 %vm77_vm0, %v6368_v19  ;;  %5176 = vmatprep.mubr.msk.f32.mxu0 %vm77_vm0, %v6373_v20 }
  0x3b   :  { %5208 = vmatprep.mubr.msk.f32.mxu1 %vm77_vm0, %v6373_v20 }
  0x3d   :  { %5177 = vmatmul.mubr.msk.f32.gmra.mxu0 %vm77_vm0, %v6386_v21 }
  0x3e   :  { %5209 = vmatmul.mubr.msk.f32.gmra.mxu1 %vm77_vm0, %v6386_v21  ;;  %5179 = vmatprep.mubr.msk.f32.mxu0 %vm77_vm0, %v6391_v22 }
  0x3f   :  { %5211 = vmatprep.mubr.msk.f32.mxu1 %vm77_vm0, %v6391_v22 }
  0x41   :  { %5180 = vmatmul.mubr.msk.f32.gmra.mxu0 %vm77_vm0, %v6404_v23 }
  0x42   :  { %5212 = vmatmul.mubr.msk.f32.gmra.mxu1 %vm77_vm0, %v6404_v23  ;;  %5246 = vmatprep.mubr.f32.mxu0 %v275_v24  ;;  %v683_v24 = vld [vmem:[#allocation4 + $0x48] sm:$0xff] }
  0x43   :  { %5296 = vmatprep.mubr.f32.mxu1 %v65_v25  ;;  %v282_v25 = vld [vmem:[#allocation2 + $0x98] sm:$0xff] }
  0xe5   :  { %v6410_v26 = vpop.f32.mrf.mxu0 }
  0xe6   :  { %v6412_v27 = vpop.f32.mrf.mxu1 }
  0xe7   :  { %v6414_v28 = vpop.f32.mrf.mxu0 }
  0xe8   :  { %v6416_v29 = vpop.f32.mrf.mxu1 }
  0xe9   :  { %v6418_v30 = vpop.f32.mrf.mxu0 }
  0xea   :  { %v6420_v31 = vpop.f32.mrf.mxu1 }
  0xeb   :  { %v6422_v32 = vpop.f32.mrf.mxu0 }
  0xec   :  { %v6424_v33 = vpop.f32.mrf.mxu1 }
  0xed   :  { %v6426_v34 = vpop.f32.mrf.mxu0 }
  0xee   :  { %v6428_v35 = vpop.f32.mrf.mxu1 }
  0xef   :  { %v6430_v36 = vpop.f32.mrf.mxu0 }
  0xf0   :  { %v6432_v37 = vpop.f32.mrf.mxu1 }
  0xf1   :  { %v5169_v38 = vpop.f32.mrf.mxu0 }
  0xf2   :  { %v5201_v39 = vpop.f32.mrf.mxu1 }
  0xf3   :  { %v222_v40 = vpop.f32.mrf.mxu0 }
  0xf4   :  { %v383_v41 = vpop.f32.mrf.mxu1 }
  0xf5   :  { %v5172_v42 = vpop.f32.mrf.mxu0 }
  0xf6   :  { %v5204_v43 = vpop.f32.mrf.mxu1 }
  0xf7   :  { %v232_v44 = vpop.f32.mrf.mxu0 }
  0xf8   :  { %v393_v45 = vpop.f32.mrf.mxu1 }
  0xf9   :  { %v5175_v46 = vpop.f32.mrf.mxu0 }
  0xfa   :  { %v5207_v47 = vpop.f32.mrf.mxu1 }
  0xfb   :  { %v242_v48 = vpop.f32.mrf.mxu0 }
  0xfc   :  { %v403_v49 = vpop.f32.mrf.mxu1 }
  0xfd   :  { %v5178_v50 = vpop.f32.mrf.mxu0 }
  0xfe   :  { %v5210_v51 = vpop.f32.mrf.mxu1 }
  0xff   :  { %v252_v52 = vpop.f32.mrf.mxu0 }
 0x100   :  { %v413_v53 = vpop.f32.mrf.mxu1 }
 0x101   :  { %v5181_v54 = vpop.f32.mrf.mxu0 }
 0x102   :  { %v5213_v55 = vpop.f32.mrf.mxu1  ;;  %5264 = vmatprep.subr.mxu1 %v5181_v54 }
 0x103   :  { %5214 = vmatprep.subr.mxu0 %v5213_v55  ;;  %v262_v56 = vpop.f32.mrf.mxu0  ;;  %5265 = vmatpush3.msra.mxu1 %v5181_v54  ;;  %v2174_v54 = vld [vmem:[#allocation4 + $0xf0] sm:$0xff] }
 0x104   :  { %v423_v57 = vpop.f32.mrf.mxu1  ;;  %5215 = vmatpush3.msra.mxu0 %v5213_v55  ;;  %5266 = vmatprep.subr.mxu1 %v262_v56  ;;  %v2173_v55 = vld [vmem:[#allocation4 + $0xe8] sm:$0xff] }
 0x105   :  { %5216 = vmatprep.subr.mxu0 %v423_v57  ;;  %5267 = vmatpush3.msra.mxu1 %v262_v56  ;;  %v2172_v56 = vld [vmem:[#allocation4 + $0xe0] sm:$0xff] }
 0x106   :  { %5217 = vmatpush3.msra.mxu0 %v423_v57  ;;  %5268 = vmatprep.subr.mxu1 %v5178_v50  ;;  %v2473_v57 = vld [vmem:[#allocation4 + $0x118] sm:$0xff] }
 0x107   :  { %5218 = vmatprep.subr.mxu0 %v5210_v51  ;;  %5269 = vmatpush3.msra.mxu1 %v5178_v50  ;;  %v1875_v50 = vld [vmem:[#allocation4 + $0xc8] sm:$0xff] }
 0x108   :  { %5219 = vmatpush3.msra.mxu0 %v5210_v51  ;;  %5270 = vmatprep.subr.mxu1 %v252_v52  ;;  %v1874_v51 = vld [vmem:[#allocation4 + $0xc0] sm:$0xff] }
 0x109   :  { %5220 = vmatprep.subr.mxu0 %v413_v53  ;;  %5271 = vmatpush3.msra.mxu1 %v252_v52  ;;  %v2175_v52 = vld [vmem:[#allocation4 + $0xf8] sm:$0xff] }
 0x10a   :  { %5221 = vmatpush3.msra.mxu0 %v413_v53  ;;  %5272 = vmatprep.subr.mxu1 %v5175_v46  ;;  %v686_v53 = vld [vmem:[#allocation2 + $0xc0] sm:$0xff] }
 0x10b   :  { %5222 = vmatprep.subr.mxu0 %v5207_v47  ;;  %5273 = vmatpush3.msra.mxu1 %v5175_v46  ;;  %v1577_v46 = vld [vmem:[#allocation4 + $0xa8] sm:$0xff] }
 0x10c   :  { %5223 = vmatpush3.msra.mxu0 %v5207_v47  ;;  %5274 = vmatprep.subr.mxu1 %v242_v48  ;;  %v1576_v47 = vld [vmem:[#allocation4 + $0xa0] sm:$0xff] }
 0x10d   :  { %5224 = vmatprep.subr.mxu0 %v403_v49  ;;  %5275 = vmatpush3.msra.mxu1 %v242_v48  ;;  %v1877_v48 = vld [vmem:[#allocation4 + $0xd8] sm:$0xff] }
 0x10e   :  { %5225 = vmatpush3.msra.mxu0 %v403_v49  ;;  %5276 = vmatprep.subr.mxu1 %v5172_v42  ;;  %v1876_v49 = vld [vmem:[#allocation4 + $0xd0] sm:$0xff] }
 0x10f   :  { %5226 = vmatprep.subr.mxu0 %v5204_v43  ;;  %5277 = vmatpush3.msra.mxu1 %v5172_v42  ;;  %v1279_v42 = vld [vmem:[#allocation4 + $0x88] sm:$0xff] }
 0x110   :  { %5227 = vmatpush3.msra.mxu0 %v5204_v43  ;;  %5278 = vmatprep.subr.mxu1 %v232_v44  ;;  %v1278_v43 = vld [vmem:[#allocation4 + $0x80] sm:$0xff] }
 0x111   :  { %5228 = vmatprep.subr.mxu0 %v393_v45  ;;  %5279 = vmatpush3.msra.mxu1 %v232_v44  ;;  %v1579_v44 = vld [vmem:[#allocation4 + $0xb8] sm:$0xff] }
 0x112   :  { %5229 = vmatpush3.msra.mxu0 %v393_v45  ;;  %5280 = vmatprep.subr.mxu1 %v5169_v38  ;;  %v1578_v45 = vld [vmem:[#allocation4 + $0xb0] sm:$0xff] }
 0x113   :  { %5230 = vmatprep.subr.mxu0 %v5201_v39  ;;  %5281 = vmatpush3.msra.mxu1 %v5169_v38  ;;  %v981_v38 = vld [vmem:[#allocation4 + $0x68] sm:$0xff] }
 0x114   :  { %5231 = vmatpush3.msra.mxu0 %v5201_v39  ;;  %5282 = vmatprep.subr.mxu1 %v222_v40  ;;  %v980_v39 = vld [vmem:[#allocation4 + $0x60] sm:$0xff] }
 0x115   :  { %5232 = vmatprep.subr.mxu0 %v383_v41  ;;  %5283 = vmatpush3.msra.mxu1 %v222_v40  ;;  %v1281_v40 = vld [vmem:[#allocation4 + $0x98] sm:$0xff] }
 0x116   :  { %5233 = vmatpush3.msra.mxu0 %v383_v41  ;;  %5284 = vmatprep.subr.mxu1 %v6426_v34  ;;  %v1280_v41 = vld [vmem:[#allocation4 + $0x90] sm:$0xff] }
 0x117   :  { %5234 = vmatprep.subr.mxu0 %v6428_v35  ;;  %5285 = vmatpush3.msra.mxu1 %v6426_v34  ;;  %v983_v34 = vld [vmem:[#allocation4 + $0x78] sm:$0xff] }
 0x118   :  { %5235 = vmatpush3.msra.mxu0 %v6428_v35  ;;  %5286 = vmatprep.subr.mxu1 %v6430_v36  ;;  %v286_v35 = vld [vmem:[#allocation2 + $0xb8] sm:$0xff] }
 0x119   :  { %5236 = vmatprep.subr.mxu0 %v6432_v37  ;;  %5287 = vmatpush3.msra.mxu1 %v6430_v36  ;;  %v76_v36 = vld [vmem:[#allocation2 + $0x58] sm:$0xff] }
 0x11a   :  { %5237 = vmatpush3.msra.mxu0 %v6432_v37  ;;  %5288 = vmatprep.subr.mxu1 %v6418_v30  ;;  %v982_v37 = vld [vmem:[#allocation4 + $0x70] sm:$0xff] }
 0x11b   :  { %5238 = vmatprep.subr.mxu0 %v6420_v31  ;;  %5289 = vmatpush3.msra.mxu1 %v6418_v30  ;;  %v284_v30 = vld [vmem:[#allocation2 + $0xa8] sm:$0xff] }
 0x11c   :  { %5239 = vmatpush3.msra.mxu0 %v6420_v31  ;;  %5290 = vmatprep.subr.mxu1 %v6422_v32  ;;  %v74_v31 = vld [vmem:[#allocation2 + $0x48] sm:$0xff] }
 0x11d   :  { %5240 = vmatprep.subr.mxu0 %v6424_v33  ;;  %5291 = vmatpush3.msra.mxu1 %v6422_v32  ;;  %v285_v32 = vld [vmem:[#allocation2 + $0xb0] sm:$0xff] }
 0x11e   :  { %5241 = vmatpush3.msra.mxu0 %v6424_v33  ;;  %5292 = vmatprep.subr.mxu1 %v6410_v26  ;;  %v75_v33 = vld [vmem:[#allocation2 + $0x50] sm:$0xff] }
 0x11f   :  { %5242 = vmatprep.subr.mxu0 %v6412_v27  ;;  %5293 = vmatpush3.msra.mxu1 %v6410_v26  ;;  %v72_v26 = vld [vmem:[#allocation2 + $0x38] sm:$0xff] }
 0x120   :  { %5243 = vmatpush3.msra.mxu0 %v6412_v27  ;;  %5294 = vmatprep.subr.mxu1 %v6414_v28  ;;  %v283_v27 = vld [vmem:[#allocation2 + $0xa0] sm:$0xff] }
 0x121   :  { %5244 = vmatprep.subr.mxu0 %v6416_v29  ;;  %5295 = vmatpush3.msra.mxu1 %v6414_v28  ;;  %v73_v28 = vld [vmem:[#allocation2 + $0x40] sm:$0xff] }
 0x122   :  { %5245 = vmatpush3.msra.mxu0 %v6416_v29  ;;  %5297 = vmatmul.mubr.f32.vlgmr.msra.gmra.mxu1 %v66_v59  ;;  %v682_v29 = vld [vmem:[#allocation4 + $0x40] sm:$0xff]  ;;  %v2471_v59 = vld [vmem:[#allocation4 + $0x108] sm:$0xff] }
 0x123   :  { %5247 = vmatmul.mubr.f32.vlgmr.msra.gmra.mxu0 %v276_v58  ;;  %5299 = vmatprep.mubr.f32.mxu1 %v67_v61  ;;  %v2472_v58 = vld [vmem:[#allocation4 + $0x110] sm:$0xff] }
 0x124   :  { %5249 = vmatprep.mubr.f32.mxu0 %v277_v60  ;;  %5314 = vmatprep.subr.mxu0 %v685_v62  ;;  %v2470_v60 = vld [vmem:[#allocation4 + $0x100] sm:$0xff] }
 0x125   :  { %5315 = vmatpush3.msra.mxu0 %v685_v62 }
 0x126   :  { %5300 = vmatmul.mubr.f32.gmra.mxu1 %v68_v0  ;;  %5316 = vmatprep.subr.mxu0 %v684_v3 }
 0x127   :  { %5250 = vmatmul.mubr.f32.gmra.mxu0 %v278_v63  ;;  %5302 = vmatprep.mubr.f32.mxu1 %v69_v2 }
 0x128   :  { %5252 = vmatprep.mubr.f32.mxu0 %v279_v1  ;;  %5317 = vmatpush3.msra.mxu0 %v684_v3 }
 0x129   :  { %5318 = vmatprep.subr.mxu0 %v683_v24 }
 0x12a   :  { %5303 = vmatmul.mubr.f32.gmra.mxu1 %v70_v5  ;;  %5319 = vmatpush3.msra.mxu0 %v683_v24 }
 0x12b   :  { %5253 = vmatmul.mubr.f32.gmra.mxu0 %v280_v4  ;;  %5305 = vmatprep.mubr.f32.mxu1 %v71_v7 }
 0x12c   :  { %5255 = vmatprep.mubr.f32.mxu0 %v281_v6  ;;  %5320 = vmatprep.subr.mxu0 %v682_v29 }
 0x12d   :  { %5321 = vmatpush3.msra.mxu0 %v682_v29 }
 0x12e   :  { %5306 = vmatmul.mubr.f32.gmra.mxu1 %v72_v26  ;;  %5396 = vmatprep.subr.mxu0 %v983_v34 }
 0x12f   :  { %5256 = vmatmul.mubr.f32.gmra.mxu0 %v282_v25  ;;  %5308 = vmatprep.mubr.f32.mxu1 %v73_v28 }
 0x130   :  { %5258 = vmatprep.mubr.f32.mxu0 %v283_v27 }
 0x132   :  { %5309 = vmatmul.mubr.f32.gmra.mxu1 %v74_v31 }
 0x133   :  { %5259 = vmatmul.mubr.f32.gmra.mxu0 %v284_v30  ;;  %5311 = vmatprep.mubr.f32.mxu1 %v75_v33 }
 0x134   :  { %5261 = vmatprep.mubr.f32.mxu0 %v285_v32 }
 0x136   :  { %5312 = vmatmul.mubr.f32.gmra.mxu1 %v76_v36 }
 0x137   :  { %5262 = vmatmul.mubr.f32.gmra.mxu0 %v286_v35  ;;  %5378 = vmatprep.mubr.f32.mxu1 %v686_v53 }
 0x138   :  { %5322 = vmatprep.mubr.msk.f32.mxu0 %vm77_vm0, %v6269_v8 }
 0x13b   :  { %5323 = vmatmul.mubr.msk.f32.vlgmr.msra.gmra.mxu0 %vm77_vm0, %v6274_v9 }
 0x13c   :  { %5325 = vmatprep.mubr.msk.f32.mxu0 %vm77_vm0, %v6281_v10  ;;  %5397 = vmatpush3.msra.mxu0 %v983_v34 }
 0x13d   :  { %5398 = vmatprep.subr.mxu0 %v982_v37 }
 0x13e   :  { %5399 = vmatpush3.msra.mxu0 %v982_v37 }
 0x13f   :  { %5326 = vmatmul.mubr.msk.f32.gmra.mxu0 %vm77_vm0, %v6296_v11  ;;  %5400 = vmatprep.subr.mxu0 %v981_v38 }
 0x140   :  { %5328 = vmatprep.mubr.msk.f32.mxu0 %vm77_vm0, %v6301_v12  ;;  %5401 = vmatpush3.msra.mxu0 %v981_v38 }
 0x141   :  { %5402 = vmatprep.subr.mxu0 %v980_v39 }
 0x142   :  { %5403 = vmatpush3.msra.mxu0 %v980_v39 }
 0x143   :  { %5329 = vmatmul.mubr.msk.f32.gmra.mxu0 %vm77_vm0, %v6314_v13  ;;  %5478 = vmatprep.subr.mxu0 %v1281_v40 }
 0x144   :  { %5331 = vmatprep.mubr.msk.f32.mxu0 %vm77_vm0, %v6319_v14 }
 0x147   :  { %5332 = vmatmul.mubr.msk.f32.gmra.mxu0 %vm77_vm0, %v6332_v15 }
 0x148   :  { %5334 = vmatprep.mubr.msk.f32.mxu0 %vm77_vm0, %v6337_v16 }
 0x14b   :  { %5335 = vmatmul.mubr.msk.f32.gmra.mxu0 %vm77_vm0, %v6350_v17 }
 0x14c   :  { %5337 = vmatprep.mubr.msk.f32.mxu0 %vm77_vm0, %v6355_v18 }
 0x14f   :  { %5338 = vmatmul.mubr.msk.f32.gmra.mxu0 %vm77_vm0, %v6368_v19 }
 0x150   :  { %5340 = vmatprep.mubr.msk.f32.mxu0 %vm77_vm0, %v6373_v20 }
 0x153   :  { %5341 = vmatmul.mubr.msk.f32.gmra.mxu0 %vm77_vm0, %v6386_v21 }
 0x154   :  { %5343 = vmatprep.mubr.msk.f32.mxu0 %vm77_vm0, %v6391_v22 }
 0x157   :  { %5344 = vmatmul.mubr.msk.f32.gmra.mxu0 %vm77_vm0, %v6404_v23 }
 0x158   :  { %5404 = vmatprep.mubr.msk.f32.mxu0 %vm77_vm0, %v6269_v8 }
 0x15b   :  { %5405 = vmatmul.mubr.msk.f32.vlgmr.msra.gmra.mxu0 %vm77_vm0, %v6274_v9 }
 0x15c   :  { %5407 = vmatprep.mubr.msk.f32.mxu0 %vm77_vm0, %v6281_v10  ;;  %5479 = vmatpush3.msra.mxu0 %v1281_v40 }
 0x15d   :  { %5480 = vmatprep.subr.mxu0 %v1280_v41 }
 0x15e   :  { %5481 = vmatpush3.msra.mxu0 %v1280_v41 }
 0x15f   :  { %5408 = vmatmul.mubr.msk.f32.gmra.mxu0 %vm77_vm0, %v6296_v11  ;;  %5482 = vmatprep.subr.mxu0 %v1279_v42 }
 0x160   :  { %5410 = vmatprep.mubr.msk.f32.mxu0 %vm77_vm0, %v6301_v12  ;;  %5483 = vmatpush3.msra.mxu0 %v1279_v42 }
 0x161   :  { %5484 = vmatprep.subr.mxu0 %v1278_v43 }
 0x162   :  { %5485 = vmatpush3.msra.mxu0 %v1278_v43 }
 0x163   :  { %5411 = vmatmul.mubr.msk.f32.gmra.mxu0 %vm77_vm0, %v6314_v13  ;;  %5560 = vmatprep.subr.mxu0 %v1579_v44 }
 0x164   :  { %5413 = vmatprep.mubr.msk.f32.mxu0 %vm77_vm0, %v6319_v14 }
 0x167   :  { %5414 = vmatmul.mubr.msk.f32.gmra.mxu0 %vm77_vm0, %v6332_v15 }
 0x168   :  { %5416 = vmatprep.mubr.msk.f32.mxu0 %vm77_vm0, %v6337_v16 }
 0x16b   :  { %5417 = vmatmul.mubr.msk.f32.gmra.mxu0 %vm77_vm0, %v6350_v17 }
 0x16c   :  { %5419 = vmatprep.mubr.msk.f32.mxu0 %vm77_vm0, %v6355_v18 }
 0x16f   :  { %5420 = vmatmul.mubr.msk.f32.gmra.mxu0 %vm77_vm0, %v6368_v19 }
 0x170   :  { %5422 = vmatprep.mubr.msk.f32.mxu0 %vm77_vm0, %v6373_v20 }
 0x173   :  { %5423 = vmatmul.mubr.msk.f32.gmra.mxu0 %vm77_vm0, %v6386_v21 }
 0x174   :  { %5425 = vmatprep.mubr.msk.f32.mxu0 %vm77_vm0, %v6391_v22 }
 0x177   :  { %5426 = vmatmul.mubr.msk.f32.gmra.mxu0 %vm77_vm0, %v6404_v23 }
 0x178   :  { %5486 = vmatprep.mubr.msk.f32.mxu0 %vm77_vm0, %v6269_v8 }
 0x17b   :  { %5487 = vmatmul.mubr.msk.f32.vlgmr.msra.gmra.mxu0 %vm77_vm0, %v6274_v9 }
 0x17c   :  { %5489 = vmatprep.mubr.msk.f32.mxu0 %vm77_vm0, %v6281_v10  ;;  %5561 = vmatpush3.msra.mxu0 %v1579_v44 }
 0x17d   :  { %5562 = vmatprep.subr.mxu0 %v1578_v45 }
 0x17e   :  { %5563 = vmatpush3.msra.mxu0 %v1578_v45 }
 0x17f   :  { %5490 = vmatmul.mubr.msk.f32.gmra.mxu0 %vm77_vm0, %v6296_v11  ;;  %5564 = vmatprep.subr.mxu0 %v1577_v46 }
 0x180   :  { %5492 = vmatprep.mubr.msk.f32.mxu0 %vm77_vm0, %v6301_v12  ;;  %5565 = vmatpush3.msra.mxu0 %v1577_v46 }
 0x181   :  { %5566 = vmatprep.subr.mxu0 %v1576_v47 }
 0x182   :  { %5567 = vmatpush3.msra.mxu0 %v1576_v47 }
 0x183   :  { %5493 = vmatmul.mubr.msk.f32.gmra.mxu0 %vm77_vm0, %v6314_v13  ;;  %5642 = vmatprep.subr.mxu0 %v1877_v48 }
 0x184   :  { %5495 = vmatprep.mubr.msk.f32.mxu0 %vm77_vm0, %v6319_v14 }
 0x187   :  { %5496 = vmatmul.mubr.msk.f32.gmra.mxu0 %vm77_vm0, %v6332_v15 }
 0x188   :  { %5498 = vmatprep.mubr.msk.f32.mxu0 %vm77_vm0, %v6337_v16 }
 0x18b   :  { %5499 = vmatmul.mubr.msk.f32.gmra.mxu0 %vm77_vm0, %v6350_v17 }
 0x18c   :  { %5501 = vmatprep.mubr.msk.f32.mxu0 %vm77_vm0, %v6355_v18 }
 0x18f   :  { %5502 = vmatmul.mubr.msk.f32.gmra.mxu0 %vm77_vm0, %v6368_v19 }
 0x190   :  { %5504 = vmatprep.mubr.msk.f32.mxu0 %vm77_vm0, %v6373_v20 }
 0x193   :  { %5505 = vmatmul.mubr.msk.f32.gmra.mxu0 %vm77_vm0, %v6386_v21 }
 0x194   :  { %5507 = vmatprep.mubr.msk.f32.mxu0 %vm77_vm0, %v6391_v22 }
 0x197   :  { %5508 = vmatmul.mubr.msk.f32.gmra.mxu0 %vm77_vm0, %v6404_v23 }
 0x198   :  { %5568 = vmatprep.mubr.msk.f32.mxu0 %vm77_vm0, %v6269_v8 }
 0x19b   :  { %5569 = vmatmul.mubr.msk.f32.vlgmr.msra.gmra.mxu0 %vm77_vm0, %v6274_v9 }
 0x19c   :  { %5571 = vmatprep.mubr.msk.f32.mxu0 %vm77_vm0, %v6281_v10  ;;  %5643 = vmatpush3.msra.mxu0 %v1877_v48 }
 0x19d   :  { %5644 = vmatprep.subr.mxu0 %v1876_v49 }
 0x19e   :  { %5645 = vmatpush3.msra.mxu0 %v1876_v49 }
 0x19f   :  { %5572 = vmatmul.mubr.msk.f32.gmra.mxu0 %vm77_vm0, %v6296_v11  ;;  %5646 = vmatprep.subr.mxu0 %v1875_v50 }
 0x1a0   :  { %5574 = vmatprep.mubr.msk.f32.mxu0 %vm77_vm0, %v6301_v12  ;;  %5647 = vmatpush3.msra.mxu0 %v1875_v50 }
 0x1a1   :  { %5648 = vmatprep.subr.mxu0 %v1874_v51 }
 0x1a2   :  { %5649 = vmatpush3.msra.mxu0 %v1874_v51 }
 0x1a3   :  { %5575 = vmatmul.mubr.msk.f32.gmra.mxu0 %vm77_vm0, %v6314_v13  ;;  %5724 = vmatprep.subr.mxu0 %v2175_v52 }
 0x1a4   :  { %5577 = vmatprep.mubr.msk.f32.mxu0 %vm77_vm0, %v6319_v14 }
 0x1a7   :  { %5578 = vmatmul.mubr.msk.f32.gmra.mxu0 %vm77_vm0, %v6332_v15 }
 0x1a8   :  { %5580 = vmatprep.mubr.msk.f32.mxu0 %vm77_vm0, %v6337_v16 }
 0x1ab   :  { %5581 = vmatmul.mubr.msk.f32.gmra.mxu0 %vm77_vm0, %v6350_v17 }
 0x1ac   :  { %5583 = vmatprep.mubr.msk.f32.mxu0 %vm77_vm0, %v6355_v18 }
 0x1af   :  { %5584 = vmatmul.mubr.msk.f32.gmra.mxu0 %vm77_vm0, %v6368_v19 }
 0x1b0   :  { %5586 = vmatprep.mubr.msk.f32.mxu0 %vm77_vm0, %v6373_v20 }
 0x1b3   :  { %5587 = vmatmul.mubr.msk.f32.gmra.mxu0 %vm77_vm0, %v6386_v21 }
 0x1b4   :  { %5589 = vmatprep.mubr.msk.f32.mxu0 %vm77_vm0, %v6391_v22 }
 0x1b7   :  { %5590 = vmatmul.mubr.msk.f32.gmra.mxu0 %vm77_vm0, %v6404_v23 }
 0x1b8   :  { %5650 = vmatprep.mubr.msk.f32.mxu0 %vm77_vm0, %v6269_v8 }
 0x1bb   :  { %5651 = vmatmul.mubr.msk.f32.vlgmr.msra.gmra.mxu0 %vm77_vm0, %v6274_v9 }
 0x1bc   :  { %5653 = vmatprep.mubr.msk.f32.mxu0 %vm77_vm0, %v6281_v10  ;;  %5725 = vmatpush3.msra.mxu0 %v2175_v52 }
 0x1bd   :  { %5726 = vmatprep.subr.mxu0 %v2174_v54 }
 0x1be   :  { %5727 = vmatpush3.msra.mxu0 %v2174_v54 }
 0x1bf   :  { %5654 = vmatmul.mubr.msk.f32.gmra.mxu0 %vm77_vm0, %v6296_v11  ;;  %5728 = vmatprep.subr.mxu0 %v2173_v55 }
 0x1c0   :  { %5656 = vmatprep.mubr.msk.f32.mxu0 %vm77_vm0, %v6301_v12  ;;  %5729 = vmatpush3.msra.mxu0 %v2173_v55 }
 0x1c1   :  { %5730 = vmatprep.subr.mxu0 %v2172_v56 }
 0x1c2   :  { %5731 = vmatpush3.msra.mxu0 %v2172_v56  ;;  %v687_v56 = vld [vmem:[#allocation2 + $0xc8] sm:$0xff] }
 0x1c3   :  { %5657 = vmatmul.mubr.msk.f32.gmra.mxu0 %vm77_vm0, %v6314_v13  ;;  %5806 = vmatprep.subr.mxu0 %v2473_v57 }
 0x1c4   :  { %5659 = vmatprep.mubr.msk.f32.mxu0 %vm77_vm0, %v6319_v14 }
 0x1c7   :  { %5660 = vmatmul.mubr.msk.f32.gmra.mxu0 %vm77_vm0, %v6332_v15 }
 0x1c8   :  { %5662 = vmatprep.mubr.msk.f32.mxu0 %vm77_vm0, %v6337_v16 }
 0x1cb   :  { %5663 = vmatmul.mubr.msk.f32.gmra.mxu0 %vm77_vm0, %v6350_v17 }
 0x1cc   :  { %5665 = vmatprep.mubr.msk.f32.mxu0 %vm77_vm0, %v6355_v18 }
 0x1cf   :  { %5666 = vmatmul.mubr.msk.f32.gmra.mxu0 %vm77_vm0, %v6368_v19 }
 0x1d0   :  { %5668 = vmatprep.mubr.msk.f32.mxu0 %vm77_vm0, %v6373_v20 }
 0x1d3   :  { %5669 = vmatmul.mubr.msk.f32.gmra.mxu0 %vm77_vm0, %v6386_v21 }
 0x1d4   :  { %5671 = vmatprep.mubr.msk.f32.mxu0 %vm77_vm0, %v6391_v22 }
 0x1d7   :  { %5672 = vmatmul.mubr.msk.f32.gmra.mxu0 %vm77_vm0, %v6404_v23 }
 0x1d8   :  { %5732 = vmatprep.mubr.msk.f32.mxu0 %vm77_vm0, %v6269_v8 }
 0x1db   :  { %5733 = vmatmul.mubr.msk.f32.vlgmr.msra.gmra.mxu0 %vm77_vm0, %v6274_v9 }
 0x1dc   :  { %5735 = vmatprep.mubr.msk.f32.mxu0 %vm77_vm0, %v6281_v10  ;;  %5807 = vmatpush3.msra.mxu0 %v2473_v57  ;;  %v688_v57 = vld [vmem:[#allocation2 + $0xd0] sm:$0xff] }
 0x1dd   :  { %5808 = vmatprep.subr.mxu0 %v2472_v58 }
 0x1de   :  { %5809 = vmatpush3.msra.mxu0 %v2472_v58 }
 0x1df   :  { %5736 = vmatmul.mubr.msk.f32.gmra.mxu0 %vm77_vm0, %v6296_v11  ;;  %5810 = vmatprep.subr.mxu0 %v2471_v59 }
 0x1e0   :  { %5738 = vmatprep.mubr.msk.f32.mxu0 %vm77_vm0, %v6301_v12  ;;  %5811 = vmatpush3.msra.mxu0 %v2471_v59 }
 0x1e1   :  { %5812 = vmatprep.subr.mxu0 %v2470_v60 }
 0x1e2   :  { %5813 = vmatpush3.msra.mxu0 %v2470_v60  ;;  %v5298_v62 = vpop.f32.mrf.mxu1  ;;  %v689_v60 = vld [vmem:[#allocation2 + $0xd8] sm:$0xff] }
 0x1e3   :  { %v5248_v61 = vpop.f32.mrf.mxu0  ;;  %5739 = vmatmul.mubr.msk.f32.gmra.mxu0 %vm77_vm0, %v6314_v13 }
 0x1e4   :  { %v6630_v63 = vadd.f32 %v5298_v62, %v5248_v61  ;;  %5741 = vmatprep.mubr.msk.f32.mxu0 %vm77_vm0, %v6319_v14  ;;  %v6636_v1 = vpop.f32.mrf.mxu1  ;;  %v690_v61 = vld [vmem:[#allocation2 + $0xe0] sm:$0xff] }
 0x1e5   :  { %v6634_v0 = vpop.f32.mrf.mxu0 }
 0x1e6   :  { %v5301_v3 = vpop.f32.mrf.mxu1 }
 0x1e7   :  { %v5251_v2 = vpop.f32.mrf.mxu0  ;;  %5742 = vmatmul.mubr.msk.f32.gmra.mxu0 %vm77_vm0, %v6332_v15 }
 0x1e8   :  { %v6640_v4 = vadd.f32 %v5301_v3, %v5251_v2  ;;  %5744 = vmatprep.mubr.msk.f32.mxu0 %vm77_vm0, %v6337_v16  ;;  %v6646_v6 = vpop.f32.mrf.mxu1  ;;  %v691_v3 = vld [vmem:[#allocation2 + $0xe8] sm:$0xff] }
 0x1e9   :  { %v6644_v5 = vpop.f32.mrf.mxu0 }
 0x1ea   :  { %v5304_v24 = vpop.f32.mrf.mxu1 }
 0x1eb   :  { %v5254_v7 = vpop.f32.mrf.mxu0  ;;  %5745 = vmatmul.mubr.msk.f32.gmra.mxu0 %vm77_vm0, %v6350_v17 }
 0x1ec   :  { %v6650_v25 = vadd.f32 %v5304_v24, %v5254_v7  ;;  %5747 = vmatprep.mubr.msk.f32.mxu0 %vm77_vm0, %v6355_v18  ;;  %v6656_v27 = vpop.f32.mrf.mxu1  ;;  %v692_v7 = vld [vmem:[#allocation2 + $0xf0] sm:$0xff] }
 0x1ed   :  { %v6654_v26 = vpop.f32.mrf.mxu0 }
 0x1ee   :  { %v5307_v29 = vpop.f32.mrf.mxu1 }
 0x1ef   :  { %v5257_v28 = vpop.f32.mrf.mxu0  ;;  %5748 = vmatmul.mubr.msk.f32.gmra.mxu0 %vm77_vm0, %v6368_v19 }
 0x1f0   :  { %v6660_v30 = vadd.f32 %v5307_v29, %v5257_v28  ;;  %5750 = vmatprep.mubr.msk.f32.mxu0 %vm77_vm0, %v6373_v20  ;;  %v6666_v32 = vpop.f32.mrf.mxu1  ;;  %v693_v29 = vld [vmem:[#allocation2 + $0xf8] sm:$0xff] }
 0x1f1   :  { %v6664_v31 = vpop.f32.mrf.mxu0 }
 0x1f2   :  { %v5310_v34 = vpop.f32.mrf.mxu1 }
 0x1f3   :  { %v5260_v33 = vpop.f32.mrf.mxu0  ;;  %5751 = vmatmul.mubr.msk.f32.gmra.mxu0 %vm77_vm0, %v6386_v21 }
 0x1f4   :  { %v6670_v35 = vadd.f32 %v5310_v34, %v5260_v33  ;;  %5753 = vmatprep.mubr.msk.f32.mxu0 %vm77_vm0, %v6391_v22  ;;  %v6676_v37 = vpop.f32.mrf.mxu1  ;;  %v694_v33 = vld [vmem:[#allocation2 + $0x100] sm:$0xff] }
 0x1f5   :  { %v6674_v36 = vpop.f32.mrf.mxu0 }
 0x1f6   :  { %v5313_v39 = vpop.f32.mrf.mxu1 }
 0x1f7   :  { %v5263_v38 = vpop.f32.mrf.mxu0  ;;  %5754 = vmatmul.mubr.msk.f32.gmra.mxu0 %vm77_vm0, %v6404_v23 }
 0x1f8   :  { %v6680_v40 = vadd.f32 %v5313_v39, %v5263_v38  ;;  %5814 = vmatprep.mubr.msk.f32.mxu0 %vm77_vm0, %v6269_v8  ;;  %v695_v39 = vld [vmem:[#allocation2 + $0x108] sm:$0xff] }
 0x1f9   :  { %v6684_v41 = vpop.f32.mrf.mxu0 }
 0x1fb   :  { %v6686_v42 = vpop.f32.mrf.mxu0  ;;  %5815 = vmatmul.mubr.msk.f32.vlgmr.msra.gmra.mxu0 %vm77_vm0, %v6274_v9 }
 0x1fc   :  { %5817 = vmatprep.mubr.msk.f32.mxu0 %vm77_vm0, %v6281_v10 }
 0x1fd   :  { %v6692_v43 = vpop.f32.mrf.mxu0 }
 0x1ff   :  { %v5327_v44 = vpop.f32.mrf.mxu0  ;;  %5818 = vmatmul.mubr.msk.f32.gmra.mxu0 %vm77_vm0, %v6296_v11 }
 0x200   :  { %5820 = vmatprep.mubr.msk.f32.mxu0 %vm77_vm0, %v6301_v12 }
 0x201   :  { %v774_v8 = vpop.f32.mrf.mxu0 }
 0x203   :  { %v5330_v45 = vpop.f32.mrf.mxu0  ;;  %5821 = vmatmul.mubr.msk.f32.gmra.mxu0 %vm77_vm0, %v6314_v13 }
 0x204   :  { %5823 = vmatprep.mubr.msk.f32.mxu0 %vm77_vm0, %v6319_v14 }
 0x205   :  { %v784_v9 = vpop.f32.mrf.mxu0 }
 0x207   :  { %v5333_v46 = vpop.f32.mrf.mxu0  ;;  %5824 = vmatmul.mubr.msk.f32.gmra.mxu0 %vm77_vm0, %v6332_v15 }
 0x208   :  { %5826 = vmatprep.mubr.msk.f32.mxu0 %vm77_vm0, %v6337_v16 }
 0x209   :  { %v794_v10 = vpop.f32.mrf.mxu0 }
 0x20b   :  { %v5336_v11 = vpop.f32.mrf.mxu0  ;;  %5827 = vmatmul.mubr.msk.f32.gmra.mxu0 %vm77_vm0, %v6350_v17 }
 0x20c   :  { %5829 = vmatprep.mubr.msk.f32.mxu0 %vm77_vm0, %v6355_v18 }
 0x20d   :  { %v804_v12 = vpop.f32.mrf.mxu0 }
 0x20f   :  { %v5339_v13 = vpop.f32.mrf.mxu0  ;;  %5830 = vmatmul.mubr.msk.f32.gmra.mxu0 %vm77_vm0, %v6368_v19 }
 0x210   :  { %5832 = vmatprep.mubr.msk.f32.mxu0 %vm77_vm0, %v6373_v20 }
 0x211   :  { %v814_v14 = vpop.f32.mrf.mxu0 }
 0x213   :  { %v5342_v15 = vpop.f32.mrf.mxu0  ;;  %5833 = vmatmul.mubr.msk.f32.gmra.mxu0 %vm77_vm0, %v6386_v21 }
 0x214   :  { %5835 = vmatprep.mubr.msk.f32.mxu0 %vm77_vm0, %v6391_v22 }
 0x215   :  { %v824_v16 = vpop.f32.mrf.mxu0 }
 0x217   :  { %v5345_v17 = vpop.f32.mrf.mxu0  ;;  %5836 = vmatmul.mubr.msk.f32.gmra.mxu0 %vm77_vm0, %v6404_v23 }
 0x218   :  { %5346 = vmatprep.subr.mxu1 %v5345_v17 }
 0x219   :  { %v834_v18 = vpop.f32.mrf.mxu0  ;;  %5347 = vmatpush3.msra.mxu1 %v5345_v17 }
 0x21a   :  { %5348 = vmatprep.subr.mxu1 %v834_v18 }
 0x21b   :  { %5349 = vmatpush3.msra.mxu1 %v834_v18  ;;  %v6720_v19 = vpop.f32.mrf.mxu0  ;;  %v987_v18 = vld [vmem:[#allocation2 + $0x138] sm:$0xff] }
 0x21c   :  { %5350 = vmatprep.subr.mxu1 %v5342_v15 }
 0x21d   :  { %5351 = vmatpush3.msra.mxu1 %v5342_v15  ;;  %v6722_v20 = vpop.f32.mrf.mxu0  ;;  %v986_v15 = vld [vmem:[#allocation2 + $0x130] sm:$0xff] }
 0x21e   :  { %5352 = vmatprep.subr.mxu1 %v824_v16 }
 0x21f   :  { %5353 = vmatpush3.msra.mxu1 %v824_v16  ;;  %v6724_v21 = vpop.f32.mrf.mxu0 }
 0x220   :  { %5354 = vmatprep.subr.mxu1 %v5339_v13 }
 0x221   :  { %5355 = vmatpush3.msra.mxu1 %v5339_v13  ;;  %v6726_v22 = vpop.f32.mrf.mxu0 }
 0x222   :  { %5356 = vmatprep.subr.mxu1 %v814_v14 }
 0x223   :  { %5357 = vmatpush3.msra.mxu1 %v814_v14  ;;  %v6728_v23 = vpop.f32.mrf.mxu0  ;;  %v985_v14 = vld [vmem:[#allocation2 + $0x128] sm:$0xff] }
 0x224   :  { %5358 = vmatprep.subr.mxu1 %v5336_v11 }
 0x225   :  { %5359 = vmatpush3.msra.mxu1 %v5336_v11  ;;  %v6730_v47 = vpop.f32.mrf.mxu0 }
 0x226   :  { %5360 = vmatprep.subr.mxu1 %v804_v12 }
 0x227   :  { %5361 = vmatpush3.msra.mxu1 %v804_v12  ;;  %v6732_v48 = vpop.f32.mrf.mxu0 }
 0x228   :  { %5362 = vmatprep.subr.mxu1 %v5333_v46 }
 0x229   :  { %5363 = vmatpush3.msra.mxu1 %v5333_v46  ;;  %v6734_v49 = vpop.f32.mrf.mxu0 }
 0x22a   :  { %5364 = vmatprep.subr.mxu1 %v794_v10 }
 0x22b   :  { %5365 = vmatpush3.msra.mxu1 %v794_v10  ;;  %v5418_v50 = vpop.f32.mrf.mxu0 }
 0x22c   :  { %5366 = vmatprep.subr.mxu1 %v5330_v45 }
 0x22d   :  { %5367 = vmatpush3.msra.mxu1 %v5330_v45  ;;  %v1102_v51 = vpop.f32.mrf.mxu0  ;;  %v984_v45 = vld [vmem:[#allocation2 + $0x120] sm:$0xff] }
 0x22e   :  { %5368 = vmatprep.subr.mxu1 %v784_v9 }
 0x22f   :  { %5369 = vmatpush3.msra.mxu1 %v784_v9  ;;  %v5421_v52 = vpop.f32.mrf.mxu0 }
 0x230   :  { %5370 = vmatprep.subr.mxu1 %v5327_v44 }
 0x231   :  { %5371 = vmatpush3.msra.mxu1 %v5327_v44  ;;  %v1112_v53 = vpop.f32.mrf.mxu0 }
 0x232   :  { %5372 = vmatprep.subr.mxu1 %v774_v8 }
 0x233   :  { %5373 = vmatpush3.msra.mxu1 %v774_v8  ;;  %v5424_v54 = vpop.f32.mrf.mxu0  ;;  %v697_v8 = vld [vmem:[#allocation2 + $0x118] sm:$0xff] }
 0x234   :  { %5374 = vmatprep.subr.mxu1 %v6686_v42 }
 0x235   :  { %5375 = vmatpush3.msra.mxu1 %v6686_v42  ;;  %v1122_v55 = vpop.f32.mrf.mxu0  ;;  %v696_v42 = vld [vmem:[#allocation2 + $0x110] sm:$0xff] }
 0x236   :  { %5376 = vmatprep.subr.mxu1 %v6692_v43 }
 0x237   :  { %5377 = vmatpush3.msra.mxu1 %v6692_v43  ;;  %v5427_v58 = vpop.f32.mrf.mxu0 }
 0x238   :  { %5379 = vmatmul.mubr.f32.vlgmr.msra.gmra.mxu1 %v687_v56  ;;  %5428 = vmatprep.subr.mxu1 %v5427_v58 }
 0x239   :  { %v1132_v59 = vpop.f32.mrf.mxu0  ;;  %5429 = vmatpush3.msra.mxu1 %v5427_v58  ;;  %5381 = vmatprep.mubr.f32.mxu1 %v688_v57  ;;  %v995_v57 = vld [vmem:[#allocation2 + $0x178] sm:$0xff]  ;;  %v1282_v58 = vld [vmem:[#allocation2 + $0x180] sm:$0xff] }
 0x23a   :  { %5430 = vmatprep.subr.mxu1 %v1132_v59 }
 0x23b   :  { %5431 = vmatpush3.msra.mxu1 %v1132_v59  ;;  %v6740_v62 = vpop.f32.mrf.mxu0 }
 0x23c   :  { %5382 = vmatmul.mubr.f32.gmra.mxu1 %v689_v60  ;;  %5432 = vmatprep.subr.mxu1 %v5424_v54 }
 0x23d   :  { %5433 = vmatpush3.msra.mxu1 %v5424_v54  ;;  %v6742_v2 = vpop.f32.mrf.mxu0  ;;  %5384 = vmatprep.mubr.f32.mxu1 %v690_v61  ;;  %v994_v54 = vld [vmem:[#allocation2 + $0x170] sm:$0xff] }
 0x23e   :  { %5434 = vmatprep.subr.mxu1 %v1122_v55 }
 0x23f   :  { %5435 = vmatpush3.msra.mxu1 %v1122_v55  ;;  %v6744_v24 = vpop.f32.mrf.mxu0 }
 0x240   :  { %5385 = vmatmul.mubr.f32.gmra.mxu1 %v691_v3  ;;  %5436 = vmatprep.subr.mxu1 %v5421_v52 }
 0x241   :  { %5437 = vmatpush3.msra.mxu1 %v5421_v52  ;;  %v6746_v28 = vpop.f32.mrf.mxu0  ;;  %5387 = vmatprep.mubr.f32.mxu1 %v692_v7 }
 0x242   :  { %5438 = vmatprep.subr.mxu1 %v1112_v53 }
 0x243   :  { %5439 = vmatpush3.msra.mxu1 %v1112_v53  ;;  %v6748_v34 = vpop.f32.mrf.mxu0  ;;  %v993_v53 = vld [vmem:[#allocation2 + $0x168] sm:$0xff] }
 0x244   :  { %5388 = vmatmul.mubr.f32.gmra.mxu1 %v693_v29  ;;  %5440 = vmatprep.subr.mxu1 %v5418_v50 }
 0x245   :  { %5441 = vmatpush3.msra.mxu1 %v5418_v50  ;;  %v6750_v38 = vpop.f32.mrf.mxu0  ;;  %5390 = vmatprep.mubr.f32.mxu1 %v694_v33  ;;  %v992_v50 = vld [vmem:[#allocation2 + $0x160] sm:$0xff]  ;;  %v1283_v33 = vld [vmem:[#allocation2 + $0x188] sm:$0xff] }
 0x246   :  { %5442 = vmatprep.subr.mxu1 %v1102_v51 }
 0x247   :  { %5443 = vmatpush3.msra.mxu1 %v1102_v51  ;;  %v6752_v43 = vpop.f32.mrf.mxu0 }
 0x248   :  { %5391 = vmatmul.mubr.f32.gmra.mxu1 %v695_v39  ;;  %5444 = vmatprep.subr.mxu1 %v6732_v48  ;;  %v1285_v39 = vld [vmem:[#allocation2 + $0x198] sm:$0xff] }
 0x249   :  { %5445 = vmatpush3.msra.mxu1 %v6732_v48  ;;  %v6756_v44 = vpop.f32.mrf.mxu0  ;;  %5393 = vmatprep.mubr.f32.mxu1 %v696_v42 }
 0x24a   :  { %5446 = vmatprep.subr.mxu1 %v6734_v49 }
 0x24b   :  { %5447 = vmatpush3.msra.mxu1 %v6734_v49  ;;  %v5500_v9 = vpop.f32.mrf.mxu0  ;;  %v991_v49 = vld [vmem:[#allocation2 + $0x158] sm:$0xff] }
 0x24c   :  { %5394 = vmatmul.mubr.f32.gmra.mxu1 %v697_v8  ;;  %5448 = vmatprep.subr.mxu1 %v6728_v23 }
 0x24d   :  { %5449 = vmatpush3.msra.mxu1 %v6728_v23  ;;  %v1400_v46 = vpop.f32.mrf.mxu0  ;;  %5460 = vmatprep.mubr.f32.mxu1 %v984_v45  ;;  %v989_v23 = vld [vmem:[#allocation2 + $0x148] sm:$0xff] }
 0x24e   :  { %5450 = vmatprep.subr.mxu1 %v6730_v47 }
 0x24f   :  { %5451 = vmatpush3.msra.mxu1 %v6730_v47  ;;  %v5503_v10 = vpop.f32.mrf.mxu0 }
 0x250   :  { %5452 = vmatprep.subr.mxu1 %v6724_v21 }
 0x251   :  { %5453 = vmatpush3.msra.mxu1 %v6724_v21  ;;  %v1410_v11 = vpop.f32.mrf.mxu0  ;;  %v988_v21 = vld [vmem:[#allocation2 + $0x140] sm:$0xff] }
 0x252   :  { %5454 = vmatprep.subr.mxu1 %v6726_v22 }
 0x253   :  { %5455 = vmatpush3.msra.mxu1 %v6726_v22  ;;  %v5506_v12 = vpop.f32.mrf.mxu0 }
 0x254   :  { %5456 = vmatprep.subr.mxu1 %v6720_v19 }
 0x255   :  { %5457 = vmatpush3.msra.mxu1 %v6720_v19  ;;  %v1420_v13 = vpop.f32.mrf.mxu0 }
 0x256   :  { %5458 = vmatprep.subr.mxu1 %v6722_v20 }
 0x257   :  { %5459 = vmatpush3.msra.mxu1 %v6722_v20  ;;  %v5509_v16 = vpop.f32.mrf.mxu0  ;;  %v990_v20 = vld [vmem:[#allocation2 + $0x150] sm:$0xff] }
 0x258   :  { %5461 = vmatmul.mubr.f32.vlgmr.msra.gmra.mxu1 %v985_v14  ;;  %5510 = vmatprep.subr.mxu1 %v5509_v16 }
 0x259   :  { %v1430_v17 = vpop.f32.mrf.mxu0  ;;  %5511 = vmatpush3.msra.mxu1 %v5509_v16  ;;  %5463 = vmatprep.mubr.f32.mxu1 %v986_v15  ;;  %v1293_v16 = vld [vmem:[#allocation2 + $0x1d8] sm:$0xff] }
 0x25a   :  { %5512 = vmatprep.subr.mxu1 %v1430_v17 }
 0x25b   :  { %5513 = vmatpush3.msra.mxu1 %v1430_v17  ;;  %v6772_v22 = vpop.f32.mrf.mxu0  ;;  %v1580_v17 = vld [vmem:[#allocation2 + $0x1e0] sm:$0xff] }
 0x25c   :  { %5464 = vmatmul.mubr.f32.gmra.mxu1 %v987_v18  ;;  %5514 = vmatprep.subr.mxu1 %v5506_v12 }
 0x25d   :  { %5515 = vmatpush3.msra.mxu1 %v5506_v12  ;;  %v6774_v19 = vpop.f32.mrf.mxu0  ;;  %5466 = vmatprep.mubr.f32.mxu1 %v988_v21  ;;  %v1291_v12 = vld [vmem:[#allocation2 + $0x1c8] sm:$0xff] }
 0x25e   :  { %5516 = vmatprep.subr.mxu1 %v1420_v13 }
 0x25f   :  { %5517 = vmatpush3.msra.mxu1 %v1420_v13  ;;  %v6776_v47 = vpop.f32.mrf.mxu0  ;;  %v1292_v13 = vld [vmem:[#allocation2 + $0x1d0] sm:$0xff] }
 0x260   :  { %5467 = vmatmul.mubr.f32.gmra.mxu1 %v989_v23  ;;  %5518 = vmatprep.subr.mxu1 %v5503_v10 }
 0x261   :  { %5519 = vmatpush3.msra.mxu1 %v5503_v10  ;;  %v6778_v48 = vpop.f32.mrf.mxu0  ;;  %5469 = vmatprep.mubr.f32.mxu1 %v990_v20 }
 0x262   :  { %5520 = vmatprep.subr.mxu1 %v1410_v11 }
 0x263   :  { %5521 = vmatpush3.msra.mxu1 %v1410_v11  ;;  %v6780_v51 = vpop.f32.mrf.mxu0 }
 0x264   :  { %5470 = vmatmul.mubr.f32.gmra.mxu1 %v991_v49  ;;  %5522 = vmatprep.subr.mxu1 %v5500_v9 }
 0x265   :  { %5523 = vmatpush3.msra.mxu1 %v5500_v9  ;;  %v6782_v52 = vpop.f32.mrf.mxu0  ;;  %5472 = vmatprep.mubr.f32.mxu1 %v992_v50  ;;  %v1289_v9 = vld [vmem:[#allocation2 + $0x1b8] sm:$0xff] }
 0x266   :  { %5524 = vmatprep.subr.mxu1 %v1400_v46 }
 0x267   :  { %5525 = vmatpush3.msra.mxu1 %v1400_v46  ;;  %v6784_v55 = vpop.f32.mrf.mxu0  ;;  %v1290_v46 = vld [vmem:[#allocation2 + $0x1c0] sm:$0xff] }
 0x268   :  { %5473 = vmatmul.mubr.f32.gmra.mxu1 %v993_v53  ;;  %5526 = vmatprep.subr.mxu1 %v6752_v43 }
 0x269   :  { %5527 = vmatpush3.msra.mxu1 %v6752_v43  ;;  %v6788_v56 = vpop.f32.mrf.mxu0  ;;  %5475 = vmatprep.mubr.f32.mxu1 %v994_v54  ;;  %v1583_v54 = vld [vmem:[#allocation2 + $0x1f8] sm:$0xff] }
 0x26a   :  { %5528 = vmatprep.subr.mxu1 %v6756_v44 }
 0x26b   :  { %5529 = vmatpush3.msra.mxu1 %v6756_v44  ;;  %v5582_v59 = vpop.f32.mrf.mxu0  ;;  %v1288_v44 = vld [vmem:[#allocation2 + $0x1b0] sm:$0xff] }
 0x26c   :  { %5476 = vmatmul.mubr.f32.gmra.mxu1 %v995_v57  ;;  %5530 = vmatprep.subr.mxu1 %v6748_v34 }
 0x26d   :  { %5531 = vmatpush3.msra.mxu1 %v6748_v34  ;;  %v1698_v60 = vpop.f32.mrf.mxu0  ;;  %5542 = vmatprep.mubr.f32.mxu1 %v1282_v58  ;;  %v1284_v34 = vld [vmem:[#allocation2 + $0x190] sm:$0xff] }
 0x26e   :  { %5532 = vmatprep.subr.mxu1 %v6750_v38 }
 0x26f   :  { %5533 = vmatpush3.msra.mxu1 %v6750_v38  ;;  %v5585_v61 = vpop.f32.mrf.mxu0 }
 0x270   :  { %5534 = vmatprep.subr.mxu1 %v6744_v24 }
 0x271   :  { %5535 = vmatpush3.msra.mxu1 %v6744_v24  ;;  %v1708_v3 = vpop.f32.mrf.mxu0 }
 0x272   :  { %5536 = vmatprep.subr.mxu1 %v6746_v28 }
 0x273   :  { %5537 = vmatpush3.msra.mxu1 %v6746_v28  ;;  %v5588_v7 = vpop.f32.mrf.mxu0  ;;  %v1286_v28 = vld [vmem:[#allocation2 + $0x1a0] sm:$0xff] }
 0x274   :  { %5538 = vmatprep.subr.mxu1 %v6740_v62 }
 0x275   :  { %5539 = vmatpush3.msra.mxu1 %v6740_v62  ;;  %v1718_v29 = vpop.f32.mrf.mxu0  ;;  %v2474_v62 = vld [vmem:[#allocation2 + $0x300] sm:$0xff] }
 0x276   :  { %5540 = vmatprep.subr.mxu1 %v6742_v2  ;;  %5870 = vmatprep.mubr.f32.mxu0 %v2474_v62 }
 0x277   :  { %5541 = vmatpush3.msra.mxu1 %v6742_v2  ;;  %v5591_v38 = vpop.f32.mrf.mxu0  ;;  %v1287_v2 = vld [vmem:[#allocation2 + $0x1a8] sm:$0xff] }
 0x278   :  { %5543 = vmatmul.mubr.f32.vlgmr.msra.gmra.mxu1 %v1283_v33  ;;  %5592 = vmatprep.subr.mxu1 %v5591_v38 }
 0x279   :  { %v1728_v24 = vpop.f32.mrf.mxu0  ;;  %5593 = vmatpush3.msra.mxu1 %v5591_v38  ;;  %5545 = vmatprep.mubr.f32.mxu1 %v1284_v34  ;;  %v1591_v38 = vld [vmem:[#allocation2 + $0x238] sm:$0xff] }
 0x27a   :  { %5594 = vmatprep.subr.mxu1 %v1728_v24 }
 0x27b   :  { %5595 = vmatpush3.msra.mxu1 %v1728_v24  ;;  %v6804_v42 = vpop.f32.mrf.mxu0  ;;  %v1878_v24 = vld [vmem:[#allocation2 + $0x240] sm:$0xff] }
 0x27c   :  { %5546 = vmatmul.mubr.f32.gmra.mxu1 %v1285_v39  ;;  %5596 = vmatprep.subr.mxu1 %v5588_v7 }
 0x27d   :  { %5597 = vmatpush3.msra.mxu1 %v5588_v7  ;;  %v6806_v43 = vpop.f32.mrf.mxu0  ;;  %5548 = vmatprep.mubr.f32.mxu1 %v1286_v28  ;;  %v1589_v7 = vld [vmem:[#allocation2 + $0x228] sm:$0xff] }
 0x27e   :  { %5598 = vmatprep.subr.mxu1 %v1718_v29 }
 0x27f   :  { %5599 = vmatpush3.msra.mxu1 %v1718_v29  ;;  %v6808_v8 = vpop.f32.mrf.mxu0  ;;  %v1590_v29 = vld [vmem:[#allocation2 + $0x230] sm:$0xff] }
 0x280   :  { %5549 = vmatmul.mubr.f32.gmra.mxu1 %v1287_v2  ;;  %5600 = vmatprep.subr.mxu1 %v5585_v61 }
 0x281   :  { %5601 = vmatpush3.msra.mxu1 %v5585_v61  ;;  %v6810_v45 = vpop.f32.mrf.mxu0  ;;  %5551 = vmatprep.mubr.f32.mxu1 %v1288_v44 }
 0x282   :  { %5602 = vmatprep.subr.mxu1 %v1708_v3 }
 0x283   :  { %5603 = vmatpush3.msra.mxu1 %v1708_v3  ;;  %v6812_v10 = vpop.f32.mrf.mxu0 }
 0x284   :  { %5552 = vmatmul.mubr.f32.gmra.mxu1 %v1289_v9  ;;  %5604 = vmatprep.subr.mxu1 %v5582_v59 }
 0x285   :  { %5605 = vmatpush3.msra.mxu1 %v5582_v59  ;;  %v6814_v11 = vpop.f32.mrf.mxu0  ;;  %5554 = vmatprep.mubr.f32.mxu1 %v1290_v46  ;;  %v1587_v59 = vld [vmem:[#allocation2 + $0x218] sm:$0xff]  ;;  %v1879_v46 = vld [vmem:[#allocation2 + $0x248] sm:$0xff] }
 0x286   :  { %5606 = vmatprep.subr.mxu1 %v1698_v60 }
 0x287   :  { %5607 = vmatpush3.msra.mxu1 %v1698_v60  ;;  %v6816_v14 = vpop.f32.mrf.mxu0  ;;  %v1588_v60 = vld [vmem:[#allocation2 + $0x220] sm:$0xff] }
 0x288   :  { %5555 = vmatmul.mubr.f32.gmra.mxu1 %v1291_v12  ;;  %5608 = vmatprep.subr.mxu1 %v6784_v55  ;;  %v1881_v12 = vld [vmem:[#allocation2 + $0x258] sm:$0xff] }
 0x289   :  { %5609 = vmatpush3.msra.mxu1 %v6784_v55  ;;  %v6820_v15 = vpop.f32.mrf.mxu0  ;;  %5557 = vmatprep.mubr.f32.mxu1 %v1292_v13 }
 0x28a   :  { %5610 = vmatprep.subr.mxu1 %v6788_v56 }
 0x28b   :  { %5611 = vmatpush3.msra.mxu1 %v6788_v56  ;;  %v5664_v18 = vpop.f32.mrf.mxu0  ;;  %v1585_v56 = vld [vmem:[#allocation2 + $0x208] sm:$0xff] }
 0x28c   :  { %5558 = vmatmul.mubr.f32.gmra.mxu1 %v1293_v16  ;;  %5612 = vmatprep.subr.mxu1 %v6780_v51 }
 0x28d   :  { %5613 = vmatpush3.msra.mxu1 %v6780_v51  ;;  %v1996_v21 = vpop.f32.mrf.mxu0  ;;  %5624 = vmatprep.mubr.f32.mxu1 %v1580_v17  ;;  %v1581_v51 = vld [vmem:[#allocation2 + $0x1e8] sm:$0xff]  ;;  %v1885_v17 = vld [vmem:[#allocation2 + $0x278] sm:$0xff] }
 0x28e   :  { %5614 = vmatprep.subr.mxu1 %v6782_v52 }
 0x28f   :  { %5615 = vmatpush3.msra.mxu1 %v6782_v52  ;;  %v5667_v23 = vpop.f32.mrf.mxu0  ;;  %v1582_v52 = vld [vmem:[#allocation2 + $0x1f0] sm:$0xff] }
 0x290   :  { %5616 = vmatprep.subr.mxu1 %v6776_v47 }
 0x291   :  { %5617 = vmatpush3.msra.mxu1 %v6776_v47  ;;  %v2006_v20 = vpop.f32.mrf.mxu0 }
 0x292   :  { %5618 = vmatprep.subr.mxu1 %v6778_v48 }
 0x293   :  { %5619 = vmatpush3.msra.mxu1 %v6778_v48  ;;  %v5670_v49 = vpop.f32.mrf.mxu0  ;;  %v1584_v48 = vld [vmem:[#allocation2 + $0x200] sm:$0xff] }
 0x294   :  { %5620 = vmatprep.subr.mxu1 %v6772_v22 }
 0x295   :  { %5621 = vmatpush3.msra.mxu1 %v6772_v22  ;;  %v2016_v50 = vpop.f32.mrf.mxu0 }
 0x296   :  { %5622 = vmatprep.subr.mxu1 %v6774_v19 }
 0x297   :  { %5623 = vmatpush3.msra.mxu1 %v6774_v19  ;;  %v5673_v53 = vpop.f32.mrf.mxu0  ;;  %v1586_v19 = vld [vmem:[#allocation2 + $0x210] sm:$0xff] }
 0x298   :  { %5625 = vmatmul.mubr.f32.vlgmr.msra.gmra.mxu1 %v1581_v51  ;;  %5674 = vmatprep.subr.mxu1 %v5673_v53 }
 0x299   :  { %v2026_v47 = vpop.f32.mrf.mxu0  ;;  %5675 = vmatpush3.msra.mxu1 %v5673_v53  ;;  %5627 = vmatprep.mubr.f32.mxu1 %v1582_v52  ;;  %v1889_v52 = vld [vmem:[#allocation2 + $0x298] sm:$0xff]  ;;  %v2176_v53 = vld [vmem:[#allocation2 + $0x2a0] sm:$0xff] }
 0x29a   :  { %5676 = vmatprep.subr.mxu1 %v2026_v47 }
 0x29b   :  { %5677 = vmatpush3.msra.mxu1 %v2026_v47  ;;  %v6836_v55 = vpop.f32.mrf.mxu0 }
 0x29c   :  { %5628 = vmatmul.mubr.f32.gmra.mxu1 %v1583_v54  ;;  %5678 = vmatprep.subr.mxu1 %v5670_v49 }
 0x29d   :  { %5679 = vmatpush3.msra.mxu1 %v5670_v49  ;;  %v6838_v22 = vpop.f32.mrf.mxu0  ;;  %5630 = vmatprep.mubr.f32.mxu1 %v1584_v48  ;;  %v1888_v49 = vld [vmem:[#allocation2 + $0x290] sm:$0xff] }
 0x29e   :  { %5680 = vmatprep.subr.mxu1 %v2016_v50 }
 0x29f   :  { %5681 = vmatpush3.msra.mxu1 %v2016_v50  ;;  %v6840_v57 = vpop.f32.mrf.mxu0 }
 0x2a0   :  { %5631 = vmatmul.mubr.f32.gmra.mxu1 %v1585_v56  ;;  %5682 = vmatprep.subr.mxu1 %v5667_v23 }
 0x2a1   :  { %5683 = vmatpush3.msra.mxu1 %v5667_v23  ;;  %v6842_v58 = vpop.f32.mrf.mxu0  ;;  %5633 = vmatprep.mubr.f32.mxu1 %v1586_v19 }
 0x2a2   :  { %5684 = vmatprep.subr.mxu1 %v2006_v20 }
 0x2a3   :  { %5685 = vmatpush3.msra.mxu1 %v2006_v20  ;;  %v6844_v61 = vpop.f32.mrf.mxu0  ;;  %v1887_v20 = vld [vmem:[#allocation2 + $0x288] sm:$0xff] }
 0x2a4   :  { %5634 = vmatmul.mubr.f32.gmra.mxu1 %v1587_v59  ;;  %5686 = vmatprep.subr.mxu1 %v5664_v18 }
 0x2a5   :  { %5687 = vmatpush3.msra.mxu1 %v5664_v18  ;;  %v6846_v3 = vpop.f32.mrf.mxu0  ;;  %5636 = vmatprep.mubr.f32.mxu1 %v1588_v60  ;;  %v1886_v18 = vld [vmem:[#allocation2 + $0x280] sm:$0xff]  ;;  %v2177_v60 = vld [vmem:[#allocation2 + $0x2a8] sm:$0xff] }
 0x2a6   :  { %5688 = vmatprep.subr.mxu1 %v1996_v21 }
 0x2a7   :  { %5689 = vmatpush3.msra.mxu1 %v1996_v21  ;;  %v6848_v33 = vpop.f32.mrf.mxu0 }
 0x2a8   :  { %5637 = vmatmul.mubr.f32.gmra.mxu1 %v1589_v7  ;;  %5690 = vmatprep.subr.mxu1 %v6816_v14  ;;  %v2182_v7 = vld [vmem:[#allocation2 + $0x2d0] sm:$0xff] }
 0x2a9   :  { %5691 = vmatpush3.msra.mxu1 %v6816_v14  ;;  %v6852_v34 = vpop.f32.mrf.mxu0  ;;  %5639 = vmatprep.mubr.f32.mxu1 %v1590_v29  ;;  %v1883_v14 = vld [vmem:[#allocation2 + $0x268] sm:$0xff]  ;;  %v2183_v29 = vld [vmem:[#allocation2 + $0x2d8] sm:$0xff] }
 0x2aa   :  { %5692 = vmatprep.subr.mxu1 %v6820_v15 }
 0x2ab   :  { %5693 = vmatpush3.msra.mxu1 %v6820_v15  ;;  %v5746_v39 = vpop.f32.mrf.mxu0 }
 0x2ac   :  { %5640 = vmatmul.mubr.f32.gmra.mxu1 %v1591_v38  ;;  %5694 = vmatprep.subr.mxu1 %v6812_v10  ;;  %v2186_v38 = vld [vmem:[#allocation2 + $0x2f0] sm:$0xff] }
 0x2ad   :  { %5695 = vmatpush3.msra.mxu1 %v6812_v10  ;;  %v2294_v28 = vpop.f32.mrf.mxu0  ;;  %5706 = vmatprep.mubr.f32.mxu1 %v1878_v24  ;;  %v1880_v10 = vld [vmem:[#allocation2 + $0x250] sm:$0xff]  ;;  %v2187_v24 = vld [vmem:[#allocation2 + $0x2f8] sm:$0xff] }
 0x2ae   :  { %5696 = vmatprep.subr.mxu1 %v6814_v11 }
 0x2af   :  { %5697 = vmatpush3.msra.mxu1 %v6814_v11  ;;  %v5749_v62 = vpop.f32.mrf.mxu0 }
 0x2b0   :  { %5698 = vmatprep.subr.mxu1 %v6808_v8 }
 0x2b1   :  { %5699 = vmatpush3.msra.mxu1 %v6808_v8  ;;  %v2304_v2 = vpop.f32.mrf.mxu0 }
 0x2b2   :  { %5700 = vmatprep.subr.mxu1 %v6810_v45 }
 0x2b3   :  { %5701 = vmatpush3.msra.mxu1 %v6810_v45  ;;  %v5752_v44 = vpop.f32.mrf.mxu0  ;;  %v1882_v45 = vld [vmem:[#allocation2 + $0x260] sm:$0xff] }
 0x2b4   :  { %5702 = vmatprep.subr.mxu1 %v6804_v42 }
 0x2b5   :  { %5703 = vmatpush3.msra.mxu1 %v6804_v42  ;;  %v2314_v9 = vpop.f32.mrf.mxu0 }
 0x2b6   :  { %5704 = vmatprep.subr.mxu1 %v6806_v43 }
 0x2b7   :  { %5705 = vmatpush3.msra.mxu1 %v6806_v43  ;;  %v5755_v11 = vpop.f32.mrf.mxu0  ;;  %v1884_v43 = vld [vmem:[#allocation2 + $0x270] sm:$0xff] }
 0x2b8   :  { %5707 = vmatmul.mubr.f32.vlgmr.msra.gmra.mxu1 %v1879_v46  ;;  %5756 = vmatprep.subr.mxu1 %v5755_v11  ;;  %v2475_v46 = vld [vmem:[#allocation2 + $0x308] sm:$0xff] }
 0x2b9   :  { %v2324_v8 = vpop.f32.mrf.mxu0  ;;  %5757 = vmatpush3.msra.mxu1 %v5755_v11  ;;  %5709 = vmatprep.mubr.f32.mxu1 %v1880_v10  ;;  %v2481_v10 = vld [vmem:[#allocation2 + $0x338] sm:$0xff] }
 0x2ba   :  { %5758 = vmatprep.subr.mxu1 %v2324_v8 }
 0x2bb   :  { %5759 = vmatpush3.msra.mxu1 %v2324_v8  ;;  %v6868_v13 = vpop.f32.mrf.mxu0  ;;  %v634_v8 = vadd.f32 %v6646_v6, %v6644_v5 }
 0x2bc   :  { %5710 = vmatmul.mubr.f32.gmra.mxu1 %v1881_v12  ;;  %5760 = vmatprep.subr.mxu1 %v5752_v44 }
 0x2bd   :  { %5761 = vmatpush3.msra.mxu1 %v5752_v44  ;;  %v6870_v42 = vpop.f32.mrf.mxu0  ;;  %5712 = vmatprep.mubr.f32.mxu1 %v1882_v45  ;;  %v2480_v44 = vld [vmem:[#allocation2 + $0x330] sm:$0xff] }
 0x2be   :  { %5762 = vmatprep.subr.mxu1 %v2314_v9 }
 0x2bf   :  { %5763 = vmatpush3.msra.mxu1 %v2314_v9  ;;  %v6872_v15 = vpop.f32.mrf.mxu0 }
 0x2c0   :  { %5713 = vmatmul.mubr.f32.gmra.mxu1 %v1883_v14  ;;  %5764 = vmatprep.subr.mxu1 %v5749_v62  ;;  %v2483_v14 = vld [vmem:[#allocation2 + $0x348] sm:$0xff] }
 0x2c1   :  { %5765 = vmatpush3.msra.mxu1 %v5749_v62  ;;  %v6874_v16 = vpop.f32.mrf.mxu0  ;;  %5715 = vmatprep.mubr.f32.mxu1 %v1884_v43  ;;  %v624_v62 = vadd.f32 %v6636_v1, %v6634_v0  ;;  %v2476_v0 = vld [vmem:[#allocation2 + $0x310] sm:$0xff]  ;;  %v2482_v1 = vld [vmem:[#allocation2 + $0x340] sm:$0xff] }
 0x2c2   :  { %5766 = vmatprep.subr.mxu1 %v2304_v2 }
 0x2c3   :  { %5767 = vmatpush3.msra.mxu1 %v2304_v2  ;;  %v6876_v21 = vpop.f32.mrf.mxu0 }
 0x2c4   :  { %5716 = vmatmul.mubr.f32.gmra.mxu1 %v1885_v17  ;;  %5768 = vmatprep.subr.mxu1 %v5746_v39 }
 0x2c5   :  { %5769 = vmatpush3.msra.mxu1 %v5746_v39  ;;  %v6878_v23 = vpop.f32.mrf.mxu0  ;;  %5718 = vmatprep.mubr.f32.mxu1 %v1886_v18  ;;  %v6929_v39 = vpop.f32.mrf.mxu1  ;;  %v644_v18 = vadd.f32 %v6656_v27, %v6654_v26 }
 0x2c6   :  { %5770 = vmatprep.subr.mxu1 %v2294_v28 }
 0x2c7   :  { %5771 = vmatpush3.msra.mxu1 %v2294_v28  ;;  %v6880_v50 = vpop.f32.mrf.mxu0 }
 0x2c8   :  { %5719 = vmatmul.mubr.f32.gmra.mxu1 %v1887_v20  ;;  %5772 = vmatprep.subr.mxu1 %v6848_v33  ;;  %v654_v20 = vadd.f32 %v6666_v32, %v6664_v31 }
 0x2c9   :  { %5773 = vmatpush3.msra.mxu1 %v6848_v33  ;;  %v6884_v51 = vpop.f32.mrf.mxu0  ;;  %5721 = vmatprep.mubr.f32.mxu1 %v1888_v49  ;;  %v2184_v33 = vld [vmem:[#allocation2 + $0x2e0] sm:$0xff] }
 0x2ca   :  { %5774 = vmatprep.subr.mxu1 %v6852_v34 }
 0x2cb   :  { %5775 = vmatpush3.msra.mxu1 %v6852_v34  ;;  %v6888_v47 = vpop.f32.mrf.mxu0  ;;  %v2185_v34 = vld [vmem:[#allocation2 + $0x2e8] sm:$0xff] }
 0x2cc   :  { %5722 = vmatmul.mubr.f32.gmra.mxu1 %v1889_v52  ;;  %5776 = vmatprep.subr.mxu1 %v6844_v61 }
 0x2cd   :  { %5777 = vmatpush3.msra.mxu1 %v6844_v61  ;;  %v6892_v54 = vpop.f32.mrf.mxu0  ;;  %5788 = vmatprep.mubr.f32.mxu1 %v2176_v53 }
 0x2ce   :  { %5778 = vmatprep.subr.mxu1 %v6846_v3 }
 0x2cf   :  { %5779 = vmatpush3.msra.mxu1 %v6846_v3  ;;  %v5831_v48 = vpop.f32.mrf.mxu0 }
 0x2d0   :  { %5780 = vmatprep.subr.mxu1 %v6840_v57 }
 0x2d1   :  { %5781 = vmatpush3.msra.mxu1 %v6840_v57  ;;  %v2602_v56 = vpop.f32.mrf.mxu0  ;;  %v2178_v57 = vld [vmem:[#allocation2 + $0x2b0] sm:$0xff] }
 0x2d2   :  { %5782 = vmatprep.subr.mxu1 %v6842_v58 }
 0x2d3   :  { %5783 = vmatpush3.msra.mxu1 %v6842_v58  ;;  %v5834_v19 = vpop.f32.mrf.mxu0  ;;  %v2179_v58 = vld [vmem:[#allocation2 + $0x2b8] sm:$0xff] }
 0x2d4   :  { %5784 = vmatprep.subr.mxu1 %v6836_v55 }
 0x2d5   :  { %5785 = vmatpush3.msra.mxu1 %v6836_v55  ;;  %v2612_v59 = vpop.f32.mrf.mxu0  ;;  %v2180_v55 = vld [vmem:[#allocation2 + $0x2c0] sm:$0xff] }
 0x2d6   :  { %5786 = vmatprep.subr.mxu1 %v6838_v22 }
 0x2d7   :  { %5787 = vmatpush3.msra.mxu1 %v6838_v22  ;;  %v5837_v61 = vpop.f32.mrf.mxu0  ;;  %v2181_v22 = vld [vmem:[#allocation2 + $0x2c8] sm:$0xff] }
 0x2d8   :  { %5789 = vmatmul.mubr.f32.vlgmr.msra.gmra.mxu1 %v2177_v60  ;;  %5838 = vmatprep.subr.mxu0 %v5837_v61 }
 0x2d9   :  { %6147 = vmatprep.subr.mxu1 %v5837_v61  ;;  %v2622_v3 = vpop.f32.mrf.mxu0  ;;  %5839 = vmatpush3.msra.mxu0 %v5837_v61 }
 0x2da   :  { %6163 = vmatpush3.msra.mxu1 %v5837_v61  ;;  %5840 = vmatprep.subr.mxu0 %v2622_v3 }
 0x2db   :  { %6148 = vmatprep.subr.mxu1 %v2622_v3  ;;  %5791 = vmatprep.mubr.f32.mxu1 %v2178_v57 }
 0x2dc   :  { %5841 = vmatpush3.msra.mxu0 %v2622_v3  ;;  %6164 = vmatpush3.msra.mxu1 %v2622_v3 }
 0x2dd   :  { %5792 = vmatmul.mubr.f32.gmra.mxu1 %v2179_v58  ;;  %5842 = vmatprep.subr.mxu0 %v5834_v19 }
 0x2de   :  { %6149 = vmatprep.subr.mxu1 %v5834_v19  ;;  %5843 = vmatpush3.msra.mxu0 %v5834_v19 }
 0x2df   :  { %6165 = vmatpush3.msra.mxu1 %v5834_v19  ;;  %5844 = vmatprep.subr.mxu0 %v2612_v59 }
 0x2e0   :  { %6150 = vmatprep.subr.mxu1 %v2612_v59  ;;  %5794 = vmatprep.mubr.f32.mxu1 %v2180_v55 }
 0x2e1   :  { %5845 = vmatpush3.msra.mxu0 %v2612_v59  ;;  %6166 = vmatpush3.msra.mxu1 %v2612_v59 }
 0x2e2   :  { %5795 = vmatmul.mubr.f32.gmra.mxu1 %v2181_v22  ;;  %5846 = vmatprep.subr.mxu0 %v5831_v48 }
 0x2e3   :  { %6151 = vmatprep.subr.mxu1 %v5831_v48  ;;  %5847 = vmatpush3.msra.mxu0 %v5831_v48 }
 0x2e4   :  { %6167 = vmatpush3.msra.mxu1 %v5831_v48  ;;  %5848 = vmatprep.subr.mxu0 %v2602_v56 }
 0x2e5   :  { %6152 = vmatprep.subr.mxu1 %v2602_v56  ;;  %5797 = vmatprep.mubr.f32.mxu1 %v2182_v7 }
 0x2e6   :  { %5849 = vmatpush3.msra.mxu0 %v2602_v56  ;;  %6168 = vmatpush3.msra.mxu1 %v2602_v56 }
 0x2e7   :  { %5798 = vmatmul.mubr.f32.gmra.mxu1 %v2183_v29  ;;  %5850 = vmatprep.subr.mxu0 %v6888_v47 }
 0x2e8   :  { %6153 = vmatprep.subr.mxu1 %v6888_v47  ;;  %5851 = vmatpush3.msra.mxu0 %v6888_v47 }
 0x2e9   :  { %6169 = vmatpush3.msra.mxu1 %v6888_v47  ;;  %5852 = vmatprep.subr.mxu0 %v6892_v54 }
 0x2ea   :  { %6154 = vmatprep.subr.mxu1 %v6892_v54  ;;  %5800 = vmatprep.mubr.f32.mxu1 %v2184_v33 }
 0x2eb   :  { %5853 = vmatpush3.msra.mxu0 %v6892_v54  ;;  %6170 = vmatpush3.msra.mxu1 %v6892_v54  ;;  %v674_v54 = vadd.f32 %v6929_v39, %v6684_v41 }
 0x2ec   :  { %5801 = vmatmul.mubr.f32.gmra.mxu1 %v2185_v34  ;;  %5854 = vmatprep.subr.mxu0 %v6880_v50 }
 0x2ed   :  { %6155 = vmatprep.subr.mxu1 %v6880_v50  ;;  %5855 = vmatpush3.msra.mxu0 %v6880_v50 }
 0x2ee   :  { %6171 = vmatpush3.msra.mxu1 %v6880_v50  ;;  %5856 = vmatprep.subr.mxu0 %v6884_v51 }
 0x2ef   :  { %6156 = vmatprep.subr.mxu1 %v6884_v51  ;;  %5803 = vmatprep.mubr.f32.mxu1 %v2186_v38 }
 0x2f0   :  { %5857 = vmatpush3.msra.mxu0 %v6884_v51  ;;  %6172 = vmatpush3.msra.mxu1 %v6884_v51 }
 0x2f1   :  { %5804 = vmatmul.mubr.f32.gmra.mxu1 %v2187_v24  ;;  %5858 = vmatprep.subr.mxu0 %v6876_v21 }
 0x2f2   :  { %6157 = vmatprep.subr.mxu1 %v6876_v21  ;;  %5859 = vmatpush3.msra.mxu0 %v6876_v21 }
 0x2f3   :  { %6173 = vmatpush3.msra.mxu1 %v6876_v21  ;;  %5860 = vmatprep.subr.mxu0 %v6878_v23 }
 0x2f4   :  { %6158 = vmatprep.subr.mxu1 %v6878_v23  ;;  %5861 = vmatpush3.msra.mxu0 %v6878_v23 }
 0x2f5   :  { %6174 = vmatpush3.msra.mxu1 %v6878_v23  ;;  %5862 = vmatprep.subr.mxu0 %v6872_v15 }
 0x2f6   :  { %6159 = vmatprep.subr.mxu1 %v6872_v15  ;;  %5863 = vmatpush3.msra.mxu0 %v6872_v15 }
 0x2f7   :  { %6175 = vmatpush3.msra.mxu1 %v6872_v15  ;;  %5864 = vmatprep.subr.mxu0 %v6874_v16  ;;  %v2478_v15 = vld [vmem:[#allocation2 + $0x320] sm:$0xff] }
 0x2f8   :  { %6160 = vmatprep.subr.mxu1 %v6874_v16  ;;  %5865 = vmatpush3.msra.mxu0 %v6874_v16  ;;  %v5380_v28 = vpop.f32.mrf.mxu1 }
 0x2f9   :  { %6176 = vmatpush3.msra.mxu1 %v6874_v16  ;;  %5866 = vmatprep.subr.mxu0 %v6868_v13  ;;  %v969_v2 = vadd.f32 %v5380_v28, %v6630_v63  ;;  %v2484_v16 = vld [vmem:[#allocation2 + $0x350] sm:$0xff] }
 0x2fa   :  { %6161 = vmatprep.subr.mxu1 %v6868_v13  ;;  %5867 = vmatpush3.msra.mxu0 %v6868_v13  ;;  %v909_v9 = vpop.f32.mrf.mxu1 }
 0x2fb   :  { %6177 = vmatpush3.msra.mxu1 %v6868_v13  ;;  %5868 = vmatprep.subr.mxu0 %v6870_v42  ;;  %v968_v11 = vadd.f32 %v909_v9, %v624_v62  ;;  %v2477_v13 = vld [vmem:[#allocation2 + $0x318] sm:$0xff] }
 0x2fc   :  { %6162 = vmatprep.subr.mxu1 %v6870_v42  ;;  %5869 = vmatpush3.msra.mxu0 %v6870_v42  ;;  %v5383_v63 = vpop.f32.mrf.mxu1 }
 0x2fd   :  { %6178 = vmatpush3.msra.mxu1 %v6870_v42  ;;  %5879 = vmatprep.mubr.f32.mxu1 %v2480_v44  ;;  %v971_v12 = vadd.f32 %v5383_v63, %v6640_v4  ;;  %v2479_v4 = vld [vmem:[#allocation2 + $0x328] sm:$0xff]  ;;  %v2485_v42 = vld [vmem:[#allocation2 + $0x358] sm:$0xff] }
 0x2fe   :  { %5871 = vmatmul.mubr.f32.vlgmr.msra.gmra.mxu0 %v2475_v46  ;;  %5880 = vmatmul.mubr.f32.vlgmr.msra.gmra.mxu1 %v2481_v10  ;;  %v919_v45 = vpop.f32.mrf.mxu1 }
 0x2ff   :  { %5873 = vmatprep.mubr.f32.mxu0 %v2476_v0  ;;  %5882 = vmatprep.mubr.f32.mxu1 %v2482_v1  ;;  %v970_v43 = vadd.f32 %v919_v45, %v634_v8 }
 0x300   :  { %v5386_v17 = vpop.f32.mrf.mxu1 }
 0x301   :  { %v973_v5 = vadd.f32 %v5386_v17, %v6650_v25  ;;  %v664_v25 = vadd.f32 %v6676_v37, %v6674_v36 }
 0x302   :  { %5874 = vmatmul.mubr.f32.gmra.mxu0 %v2477_v13  ;;  %5883 = vmatmul.mubr.f32.gmra.mxu1 %v2483_v14  ;;  %v929_v6 = vpop.f32.mrf.mxu1  ;;  %v6233_v14 = vmov 0.0  }
 0x303   :  { %5876 = vmatprep.mubr.f32.mxu0 %v2478_v15  ;;  %5885 = vmatprep.mubr.f32.mxu1 %v2484_v16  ;;  %v972_v21 = vadd.f32 %v929_v6, %v644_v18  ;;  %v2888_v15 = vld [vmem:[#allocation4 + $0x158] sm:$0xff]  ;;  %v2887_v6 = vld [vmem:[#allocation4 + $0x150] sm:$0xff] }
 0x304   :  { %v5389_v23 = vpop.f32.mrf.mxu1  ;;  %5888 = vmatprep.subr.mxu0 %v6233_v14  ;;  %5905 = vmatprep.subr.mxu1 %v6233_v14 }
 0x305   :  { %v975_v49 = vadd.f32 %v5389_v23, %v6660_v30  ;;  %5906 = vmatpush3.msra.mxu1 %v2888_v15  ;;  %v2886_v23 = vld [vmem:[#allocation4 + $0x148] sm:$0xff] }
 0x306   :  { %5877 = vmatmul.mubr.f32.gmra.mxu0 %v2479_v4  ;;  %5886 = vmatmul.mubr.f32.gmra.mxu1 %v2485_v42  ;;  %v939_v50 = vpop.f32.mrf.mxu1 }
 0x307   :  { %v974_v26 = vadd.f32 %v939_v50, %v654_v20  ;;  %5907 = vmatprep.subr.mxu1 %v6233_v14  ;;  %v2788_v50 = vld [vmem:[#allocation4 + $0x120] sm:$0xff]  ;;  %5896 = vmatprep.mubr.msk.f32.mxu0 %vm6234_vm1, %v6233_v14 }
 0x308   :  { %v5392_v27 = vpop.f32.mrf.mxu1  ;;  %5908 = vmatpush3.msra.mxu1 %v2887_v6  ;;  %5913 = vmatprep.mubr.msk.f32.mxu1 %vm6234_vm1, %v6233_v14 }
 0x309   :  { %v977_v51 = vadd.f32 %v5392_v27, %v6670_v35  ;;  %5909 = vmatprep.subr.mxu1 %v6233_v14 }
 0x30a   :  { %v949_v52 = vpop.f32.mrf.mxu1  ;;  %5910 = vmatpush3.msra.mxu1 %v2886_v23 }
 0x30b   :  { %v976_v53 = vadd.f32 %v949_v52, %v664_v25  ;;  %5911 = vmatprep.subr.mxu1 %v6233_v14 }
 0x30c   :  { %v5395_v47 = vpop.f32.mrf.mxu1 }
 0x30d   :  { %v979_v31 = vadd.f32 %v5395_v47, %v6680_v40 }
 0x30e   :  { %v959_v32 = vpop.f32.mrf.mxu1 }
 0x30f   :  { %v978_v30 = vadd.f32 %v959_v32, %v674_v54 }
 0x318   :  { %v5462_v48 = vpop.f32.mrf.mxu1 }
 0x319   :  { %v1267_v56 = vadd.f32 %v5462_v48, %v969_v2 }
 0x31a   :  { %v1207_v19 = vpop.f32.mrf.mxu1 }
 0x31b   :  { %v1266_v59 = vadd.f32 %v1207_v19, %v968_v11 }
 0x31c   :  { %v5465_v60 = vpop.f32.mrf.mxu1 }
 0x31d   :  { %v1269_v61 = vadd.f32 %v5465_v60, %v971_v12 }
 0x31e   :  { %v1217_v57 = vpop.f32.mrf.mxu1 }
 0x31f   :  { %v1268_v36 = vadd.f32 %v1217_v57, %v970_v43  ;;  %v2791_v43 = vld [vmem:[#allocation4 + $0x138] sm:$0xff] }
 0x320   :  { %v5468_v37 = vpop.f32.mrf.mxu1  ;;  %5889 = vmatpush3.msra.mxu0 %v2791_v43 }
 0x321   :  { %v1271_v35 = vadd.f32 %v5468_v37, %v973_v5  ;;  %5890 = vmatprep.subr.mxu0 %v6233_v14  ;;  %v2790_v5 = vld [vmem:[#allocation4 + $0x130] sm:$0xff] }
 0x322   :  { %v1227_v3 = vpop.f32.mrf.mxu1  ;;  %5891 = vmatpush3.msra.mxu0 %v2790_v5 }
 0x323   :  { %v1270_v58 = vadd.f32 %v1227_v3, %v972_v21  ;;  %5892 = vmatprep.subr.mxu0 %v6233_v14  ;;  %v2789_v21 = vld [vmem:[#allocation4 + $0x128] sm:$0xff] }
 0x324   :  { %v5471_v55 = vpop.f32.mrf.mxu1  ;;  %5893 = vmatpush3.msra.mxu0 %v2789_v21 }
 0x325   :  { %v1273_v22 = vadd.f32 %v5471_v55, %v975_v49  ;;  %5894 = vmatprep.subr.mxu0 %v6233_v14 }
 0x326   :  { %v1237_v7 = vpop.f32.mrf.mxu1  ;;  %5895 = vmatpush3.msra.mxu0 %v2788_v50 }
 0x327   :  { %v1272_v41 = vadd.f32 %v1237_v7, %v974_v26  ;;  %v2885_v26 = vld [vmem:[#allocation4 + $0x140] sm:$0xff] }
 0x328   :  { %v5474_v29 = vpop.f32.mrf.mxu1  ;;  %5912 = vmatpush3.msra.mxu1 %v2885_v26 }
 0x329   :  { %v1275_v40 = vadd.f32 %v5474_v29, %v977_v51 }
 0x32a   :  { %v1247_v33 = vpop.f32.mrf.mxu1 }
 0x32b   :  { %v1274_v34 = vadd.f32 %v1247_v33, %v976_v53 }
 0x32c   :  { %v5477_v38 = vpop.f32.mrf.mxu1 }
 0x32d   :  { %v1277_v24 = vadd.f32 %v5477_v38, %v979_v31 }
 0x32e   :  { %v1257_v39 = vpop.f32.mrf.mxu1 }
 0x32f   :  { %v1276_v28 = vadd.f32 %v1257_v39, %v978_v30 }
 0x338   :  { %v5544_v62 = vpop.f32.mrf.mxu1 }
 0x339   :  { %v1565_v2 = vadd.f32 %v5544_v62, %v1267_v56 }
 0x33a   :  { %v1505_v44 = vpop.f32.mrf.mxu1 }
 0x33b   :  { %v1564_v9 = vadd.f32 %v1505_v44, %v1266_v59 }
 0x33c   :  { %v5547_v46 = vpop.f32.mrf.mxu1 }
 0x33d   :  { %v1567_v10 = vadd.f32 %v5547_v46, %v1269_v61 }
 0x33e   :  { %v1515_v11 = vpop.f32.mrf.mxu1 }
 0x33f   :  { %v1566_v0 = vadd.f32 %v1515_v11, %v1268_v36 }
 0x340   :  { %v5550_v1 = vpop.f32.mrf.mxu1 }
 0x341   :  { %v1569_v63 = vadd.f32 %v5550_v1, %v1271_v35 }
 0x342   :  { %v1525_v8 = vpop.f32.mrf.mxu1 }
 0x343   :  { %v1568_v12 = vadd.f32 %v1525_v8, %v1270_v58 }
 0x344   :  { %v5553_v45 = vpop.f32.mrf.mxu1 }
 0x345   :  { %v1571_v13 = vadd.f32 %v5553_v45, %v1273_v22 }
 0x346   :  { %v1535_v16 = vpop.f32.mrf.mxu1 }
 0x347   :  { %v6966_v17 = vadd.f32 %v1535_v16, %v1272_v41 }
 0x348   :  { %v5556_v18 = vpop.f32.mrf.mxu1 }
 0x349   :  { %v6970_v4 = vadd.f32 %v5556_v18, %v1275_v40 }
 0x34a   :  { %v1545_v42 = vpop.f32.mrf.mxu1 }
 0x34b   :  { %v6974_v20 = vadd.f32 %v1545_v42, %v1274_v34 }
 0x34c   :  { %v5559_v49 = vpop.f32.mrf.mxu1 }
 0x34d   :  { %v1575_v27 = vadd.f32 %v5559_v49, %v1277_v24 }
 0x34e   :  { %v1555_v25 = vpop.f32.mrf.mxu1 }
 0x34f   :  { %v1574_v51 = vadd.f32 %v1555_v25, %v1276_v28 }
 0x358   :  { %v5626_v52 = vpop.f32.mrf.mxu1 }
 0x359   :  { %v1863_v53 = vadd.f32 %v5626_v52, %v1565_v2 }
 0x35a   :  { %v1803_v47 = vpop.f32.mrf.mxu1 }
 0x35b   :  { %v1862_v54 = vadd.f32 %v1803_v47, %v1564_v9 }
 0x35c   :  { %v5629_v31 = vpop.f32.mrf.mxu1 }
 0x35d   :  { %v1865_v32 = vadd.f32 %v5629_v31, %v1567_v10 }
 0x35e   :  { %v1813_v30 = vpop.f32.mrf.mxu1 }
 0x35f   :  { %v1864_v48 = vadd.f32 %v1813_v30, %v1566_v0 }
 0x360   :  { %v5632_v56 = vpop.f32.mrf.mxu1 }
 0x361   :  { %v1867_v19 = vadd.f32 %v5632_v56, %v1569_v63 }
 0x362   :  { %v1823_v59 = vpop.f32.mrf.mxu1 }
 0x363   :  { %v1866_v60 = vadd.f32 %v1823_v59, %v1568_v12 }
 0x364   :  { %v5635_v61 = vpop.f32.mrf.mxu1 }
 0x365   :  { %v1869_v57 = vadd.f32 %v5635_v61, %v1571_v13 }
 0x366   :  { %v1833_v36 = vpop.f32.mrf.mxu1 }
 0x367   :  { %v1868_v45 = vadd.f32 %v1833_v36, %v6966_v17 }
 0x368   :  { %v5638_v37 = vpop.f32.mrf.mxu1 }
 0x369   :  { %v1871_v13 = vadd.f32 %v5638_v37, %v6970_v4 }
 0x36a   :  { %v1843_v35 = vpop.f32.mrf.mxu1 }
 0x36b   :  { %v1870_v42 = vadd.f32 %v1843_v35, %v6974_v20 }
 0x36c   :  { %v5641_v3 = vpop.f32.mrf.mxu1 }
 0x36d   :  { %v1873_v21 = vadd.f32 %v5641_v3, %v1575_v27 }
 0x36e   :  { %v1853_v58 = vpop.f32.mrf.mxu1 }
 0x36f   :  { %v1872_v23 = vadd.f32 %v1853_v58, %v1574_v51 }
 0x378   :  { %v5708_v55 = vpop.f32.mrf.mxu1 }
 0x379   :  { %v2161_v49 = vadd.f32 %v5708_v55, %v1863_v53 }
 0x37a   :  { %v2101_v22 = vpop.f32.mrf.mxu1 }
 0x37b   :  { %v2160_v16 = vadd.f32 %v2101_v22, %v1862_v54 }
 0x37c   :  { %v5711_v7 = vpop.f32.mrf.mxu1 }
 0x37d   :  { %v2163_v18 = vadd.f32 %v5711_v7, %v1865_v32 }
 0x37e   :  { %v2111_v41 = vpop.f32.mrf.mxu1 }
 0x37f   :  { %v2162_v17 = vadd.f32 %v2111_v41, %v1864_v48 }
 0x380   :  { %v5714_v29 = vpop.f32.mrf.mxu1 }
 0x381   :  { %v2165_v30 = vadd.f32 %v5714_v29, %v1867_v19  ;;  %v4537_v29 = vld [vmem:[%s7185_s3] ss:$0 sm:$0xff] }
 0x382   :  { %v2121_v40 = vpop.f32.mrf.mxu1 }
 0x383   :  { %v2164_v20 = vadd.f32 %v2121_v40, %v1866_v60 }
 0x384   :  { %v5717_v33 = vpop.f32.mrf.mxu1 }
 0x385   :  { %v2167_v27 = vadd.f32 %v5717_v33, %v1869_v57 }
 0x386   :  { %v2131_v34 = vpop.f32.mrf.mxu1 }
 0x387   :  { %v2166_v5 = vadd.f32 %v2131_v34, %v1868_v45 }
 0x388   :  { %v5720_v38 = vpop.f32.mrf.mxu1 }
 0x389   :  { %v2169_v6 = vadd.f32 %v5720_v38, %v1871_v13 }
 0x38a   :  { %v2141_v24 = vpop.f32.mrf.mxu1 }
 0x38b   :  { %v2168_v4 = vadd.f32 %v2141_v24, %v1870_v42 }
 0x38c   :  { %v5723_v39 = vpop.f32.mrf.mxu1 }
 0x38d   :  { %v2171_v56 = vadd.f32 %v5723_v39, %v1873_v21 }
 0x38e   :  { %v2151_v28 = vpop.f32.mrf.mxu1 }
 0x38f   :  { %v2170_v48 = vadd.f32 %v2151_v28, %v1872_v23 }
 0x398   :  { %v5790_v62 = vpop.f32.mrf.mxu1 }
 0x399   :  { %v2459_v19 = vadd.f32 %v5790_v62, %v2161_v49 }
 0x39a   :  { %v2399_v2 = vpop.f32.mrf.mxu1 }
 0x39b   :  { %v2458_v25 = vadd.f32 %v2399_v2, %v2160_v16 }
 0x39d   :  { %v5793_v44 = vpop.f32.mrf.mxu1 }
 0x39e   :  { %v2461_v52 = vadd.f32 %v5793_v44, %v2163_v18 }
 0x39f   :  { %v2409_v9 = vpop.f32.mrf.mxu1 }
 0x3a0   :  { %v2460_v51 = vadd.f32 %v2409_v9, %v2162_v17 }
 0x3a2   :  { %v5796_v46 = vpop.f32.mrf.mxu1 }
 0x3a3   :  { %v2463_v53 = vadd.f32 %v5796_v46, %v2165_v30 }
 0x3a4   :  { %v2419_v10 = vpop.f32.mrf.mxu1 }
 0x3a5   :  { %v2462_v41 = vadd.f32 %v2419_v10, %v2164_v20  ;;  %v3169_v20 = vld [vmem:[#allocation4 + $0x168] sm:$0xff] }
 0x3a7   :  { %v5799_v11 = vpop.f32.mrf.mxu1 }
 0x3a8   :  { %v2465_v39 = vadd.f32 %v5799_v11, %v2167_v27  ;;  %v3168_v27 = vld [vmem:[#allocation4 + $0x160] sm:$0xff] }
 0x3a9   :  { %v2429_v0 = vpop.f32.mrf.mxu1 }
 0x3aa   :  { %v2464_v47 = vadd.f32 %v2429_v0, %v2166_v5  ;;  %v2889_v5 = vld [vmem:[#allocation2 + $0x380] sm:$0xff] }
 0x3ac   :  { %v5802_v1 = vpop.f32.mrf.mxu1 }
 0x3ad   :  { %v2467_v31 = vadd.f32 %v5802_v1, %v2169_v6  ;;  %v2792_v6 = vld [vmem:[#allocation2 + $0x360] sm:$0xff] }
 0x3ae   :  { %v2439_v63 = vpop.f32.mrf.mxu1 }
 0x3af   :  { %v2466_v58 = vadd.f32 %v2439_v63, %v2168_v4  ;;  %v2890_v4 = vld [vmem:[#allocation2 + $0x388] sm:$0xff] }
 0x3b1   :  { %v5805_v8 = vpop.f32.mrf.mxu1 }
 0x3b2   :  { %v2469_v55 = vadd.f32 %v5805_v8, %v2171_v56  ;;  %v2793_v56 = vld [vmem:[#allocation2 + $0x368] sm:$0xff] }
 0x3b3   :  { %v2449_v12 = vpop.f32.mrf.mxu1 }
 0x3b4   :  { %v2468_v2 = vadd.f32 %v2449_v12, %v2170_v48 }
 0x3be   :  { %v5872_v43 = vpop.f32.mrf.mxu0  ;;  %v5881_v15 = vpop.f32.mrf.mxu1 }
 0x3bf   :  { %v2757_v44 = vadd.f32 %v5872_v43, %v2459_v19  ;;  %v2763_v1 = vadd.f32 %v5881_v15, %v2465_v39  ;;  %v3174_v39 = vld [vmem:[#allocation2 + $0x3b0] sm:$0xff] }
 0x3c0   :  { %v2697_v50 = vpop.f32.mrf.mxu0  ;;  %v2727_v26 = vpop.f32.mrf.mxu1 }
 0x3c1   :  { %v2756_v32 = vadd.f32 %v2697_v50, %v2458_v25  ;;  %v2762_v61 = vadd.f32 %v2727_v26, %v2464_v47 }
 0x3c2   :  { %v5875_v59 = vpop.f32.mrf.mxu0  ;;  %v5884_v54 = vpop.f32.mrf.mxu1 }
 0x3c3   :  { %v2759_v36 = vadd.f32 %v5875_v59, %v2461_v52  ;;  %v2765_v37 = vadd.f32 %v5884_v54, %v2467_v31  ;;  %v2891_v59 = vld [vmem:[#allocation2 + $0x390] sm:$0xff]  ;;  %v3171_v54 = vld [vmem:[#allocation4 + $0x178] sm:$0xff] }
 0x3c4   :  { %v2707_v35 = vpop.f32.mrf.mxu0  ;;  %v2737_v3 = vpop.f32.mrf.mxu1 }
 0x3c5   :  { %v2768_v22 = vmax.f32 %v2756_v32, %v2759_v36  ;;  %v2771_v7 = vmax.f32 %v2762_v61, %v2765_v37  ;;  %v2758_v34 = vadd.f32 %v2707_v35, %v2460_v51  ;;  %v2764_v57 = vadd.f32 %v2737_v3, %v2466_v58  ;;  %v2794_v32 = vld [vmem:[#allocation2 + $0x370] sm:$0xff]  ;;  %v2795_v36 = vld [vmem:[#allocation2 + $0x378] sm:$0xff]  ;;  %v3172_v51 = vld [vmem:[#allocation2 + $0x3a0] sm:$0xff] }
 0x3c6   :  { %v5878_v38 = vpop.f32.mrf.mxu0  ;;  %v5887_v24 = vpop.f32.mrf.mxu1  ;;  %v3170_v61 = vld [vmem:[#allocation4 + $0x170] sm:$0xff]  ;;  %v2892_v37 = vld [vmem:[#allocation2 + $0x398] sm:$0xff] }
 0x3c7   :  { %v2774_v60 = vmax.f32 %v2768_v22, %v2771_v7  ;;  %v2761_v40 = vadd.f32 %v5878_v38, %v2463_v53  ;;  %v2767_v33 = vadd.f32 %v5887_v24, %v2469_v55 }
 0x3c8   :  { %v2717_v9 = vpop.f32.mrf.mxu0  ;;  %v2747_v46 = vpop.f32.mrf.mxu1 }
 0x3c9   :  { %v2782_v0 = vadd.f32 %v4537_v29, %v2774_v60  ;;  %v2770_v28 = vmax.f32 %v2758_v34, %v2761_v40  ;;  %v2773_v62 = vmax.f32 %v2764_v57, %v2767_v33  ;;  %v2760_v10 = vadd.f32 %v2717_v9, %v2462_v41  ;;  %v3173_v40 = vld [vmem:[#allocation2 + $0x3a8] sm:$0xff]  ;;  %v3360_v33 = vld [vmem:[#allocation4 + $0x198] sm:$0xff] }
 0x3ca   :  { %v2766_v63 = vadd.f32 %v2747_v46, %v2468_v2  ;;  %v3359_v2 = vld [vmem:[#allocation4 + $0x190] sm:$0xff]  ;;  %v3358_v9 = vld [vmem:[#allocation4 + $0x188] sm:$0xff]  ;;  %v3357_v46 = vld [vmem:[#allocation4 + $0x180] sm:$0xff] }
 0x3cb   :  { %v6988_v8 = vmax.f32 %v2782_v0, 0.0  ;;  %v2776_v45 = vmax.f32 %v2770_v28, %v2773_v62  ;;  %v2769_v13 = vmax.f32 %v2757_v44, %v2760_v10  ;;  %v3175_v44 = vld [vmem:[#allocation2 + $0x3b8] sm:$0xff]  ;;  %v3361_v0 = vld [vmem:[#allocation2 + $0x3c0] sm:$0xff] }
 0x3cc   :  { %v2772_v16 = vmax.f32 %v2763_v1, %v2766_v63 }
 0x3cd   :  { %5897 = vmatmul.mubr.msk.f32.vlgmr.msra.gmra.mxu0 %vm77_vm0, %v6988_v8  ;;  %5914 = vmatmul.mubr.msk.f32.vlgmr.msra.gmra.mxu1 %vm77_vm0, %v6988_v8  ;;  %v2784_v43 = vadd.f32 %v4537_v29, %v2776_v45 }
 0x3ce   :  { %v2775_v11 = vmax.f32 %v2769_v13, %v2772_v16  ;;  %5899 = vmatprep.mubr.msk.f32.mxu0 %vm6234_vm1, %v6233_v14  ;;  %5916 = vmatprep.mubr.msk.f32.mxu1 %vm6234_vm1, %v6233_v14 }
 0x3cf   :  { %v7008_v18 = vmax.f32 %v2784_v43, 0.0 }
 0x3d0   :  { %v2783_v12 = vadd.f32 %v4537_v29, %v2775_v11 }
 0x3d2   :  { %v6998_v15 = vmax.f32 %v2783_v12, 0.0 }
 0x3d4   :  { %5900 = vmatmul.mubr.msk.f32.gmra.mxu0 %vm77_vm0, %v6998_v15  ;;  %5917 = vmatmul.mubr.msk.f32.gmra.mxu1 %vm77_vm0, %v6998_v15 }
 0x3d5   :  { %5902 = vmatprep.mubr.msk.f32.mxu0 %vm6234_vm1, %v6233_v14  ;;  %5919 = vmatprep.mubr.msk.f32.mxu1 %vm6234_vm1, %v6233_v14 }
 0x3d8   :  { %5903 = vmatmul.mubr.msk.f32.gmra.mxu0 %vm77_vm0, %v7008_v18  ;;  %5920 = vmatmul.mubr.msk.f32.gmra.mxu1 %vm77_vm0, %v7008_v18 }
 0x3d9   :  { %5928 = vmatprep.mubr.msk.f32.mxu0 %vm2973_vm2, %v2889_v5  ;;  %5940 = vmatprep.mubr.msk.f32.mxu1 %vm2973_vm2, %v2792_v6 }
 0x48d   :  { %v2871_v42 = vpop.f32.mrf.mxu0  ;;  %v2959_v21 = vpop.f32.mrf.mxu1 }
 0x48f   :  { %v5898_v23 = vpop.f32.mrf.mxu0  ;;  %v5915_v49 = vpop.f32.mrf.mxu1 }
 0x490   :  { %v3364_v23 = vld [vmem:[#allocation2 + $0x3d8] sm:$0xff] }
 0x491   :  { %v3563_v49 = vld [vmem:[#allocation4 + $0x1d8] sm:$0xff] }
 0x494   :  { %v2876_v50 = vpop.f32.mrf.mxu0  ;;  %v2964_v26 = vpop.f32.mrf.mxu1 }
 0x496   :  { %v5901_v25 = vpop.f32.mrf.mxu0  ;;  %v5918_v52 = vpop.f32.mrf.mxu1 }
 0x497   :  { %v3648_v25 = vld [vmem:[#allocation4 + $0x210] sm:$0xff]  ;;  %v3561_v52 = vld [vmem:[#allocation4 + $0x1c8] sm:$0xff] }
 0x498   :  { %v2881_v47 = vpop.f32.mrf.mxu0  ;;  %v2969_v31 = vpop.f32.mrf.mxu1 }
 0x499   :  { %5922 = vmatprep.subr.mxu0 %v2969_v31  ;;  %5934 = vmatprep.subr.mxu1 %v2881_v47 }
 0x49a   :  { %v5904_v17 = vpop.f32.mrf.mxu0  ;;  %v5921_v30 = vpop.f32.mrf.mxu1  ;;  %5923 = vmatpush3.msra.mxu0 %v2969_v31  ;;  %5935 = vmatpush3.msra.mxu1 %v2881_v47  ;;  %v3647_v47 = vld [vmem:[#allocation4 + $0x208] sm:$0xff]  ;;  %v3560_v31 = vld [vmem:[#allocation4 + $0x1c0] sm:$0xff] }
 0x49b   :  { %5924 = vmatprep.subr.mxu0 %v2964_v26  ;;  %5936 = vmatprep.subr.mxu1 %v2876_v50  ;;  %v3646_v17 = vld [vmem:[#allocation4 + $0x200] sm:$0xff]  ;;  %v3559_v30 = vld [vmem:[#allocation4 + $0x1b8] sm:$0xff] }
 0x49c   :  { %5925 = vmatpush3.msra.mxu0 %v2964_v26  ;;  %5937 = vmatpush3.msra.mxu1 %v2876_v50  ;;  %v3649_v50 = vld [vmem:[#allocation4 + $0x218] sm:$0xff]  ;;  %v3562_v26 = vld [vmem:[#allocation4 + $0x1d0] sm:$0xff] }
 0x49d   :  { %5926 = vmatprep.subr.mxu0 %v2959_v21  ;;  %5938 = vmatprep.subr.mxu1 %v2871_v42 }
 0x49e   :  { %5927 = vmatpush3.msra.mxu0 %v2959_v21  ;;  %5939 = vmatpush3.msra.mxu1 %v2871_v42  ;;  %v3362_v42 = vld [vmem:[#allocation2 + $0x3c8] sm:$0xff]  ;;  %v3363_v21 = vld [vmem:[#allocation2 + $0x3d0] sm:$0xff] }
 0x49f   :  { %5929 = vmatmul.mubr.msk.f32.vlgmr.msra.gmra.mxu0 %vm2973_vm2, %v2890_v4  ;;  %5941 = vmatmul.mubr.msk.f32.vlgmr.msra.gmra.mxu1 %vm2973_vm2, %v2793_v56  ;;  %v3645_v4 = vld [vmem:[#allocation4 + $0x1f8] sm:$0xff]  ;;  %v3558_v56 = vld [vmem:[#allocation4 + $0x1b0] sm:$0xff] }
 0x4a0   :  { %5946 = vmatprep.subr.mxu0 %v6233_v14  ;;  %5931 = vmatprep.mubr.msk.f32.mxu0 %vm2973_vm2, %v2891_v59  ;;  %v3644_v59 = vld [vmem:[#allocation4 + $0x1f0] sm:$0xff] }
 0x4a1   :  { %5947 = vmatpush3.msra.mxu0 %v3171_v54  ;;  %5943 = vmatprep.mubr.msk.f32.mxu1 %vm2973_vm2, %v2794_v32  ;;  %v3557_v54 = vld [vmem:[#allocation4 + $0x1a8] sm:$0xff] }
 0x4a2   :  { %5948 = vmatprep.subr.mxu0 %v6233_v14  ;;  %v3643_v32 = vld [vmem:[#allocation4 + $0x1e8] sm:$0xff] }
 0x4a3   :  { %5949 = vmatpush3.msra.mxu0 %v3170_v61  ;;  %5944 = vmatmul.mubr.msk.f32.gmra.mxu1 %vm2973_vm2, %v2795_v36  ;;  %v3556_v61 = vld [vmem:[#allocation4 + $0x1a0] sm:$0xff] }
 0x4a4   :  { %5932 = vmatmul.mubr.msk.f32.gmra.mxu0 %vm2973_vm2, %v2892_v37  ;;  %5950 = vmatprep.subr.mxu0 %v6233_v14  ;;  %v3642_v36 = vld [vmem:[#allocation4 + $0x1e0] sm:$0xff] }
 0x4a5   :  { %5951 = vmatpush3.msra.mxu0 %v3169_v20  ;;  %5954 = vmatprep.mubr.msk.f32.mxu0 %vm6234_vm1, %v6233_v14 }
 0x4a6   :  { %5952 = vmatprep.subr.mxu0 %v6233_v14  ;;  %5969 = vmatprep.mubr.msk.f32.mxu1 %vm2973_vm2, %v3172_v51 }
 0x4a7   :  { %5953 = vmatpush3.msra.mxu0 %v3168_v27 }
 0x4a8   :  { %5955 = vmatmul.mubr.msk.f32.vlgmr.msra.gmra.mxu0 %vm77_vm0, %v6988_v8 }
 0x4a9   :  { %5957 = vmatprep.mubr.msk.f32.mxu0 %vm6234_vm1, %v6233_v14 }
 0x4ac   :  { %5958 = vmatmul.mubr.msk.f32.gmra.mxu0 %vm77_vm0, %v6998_v15 }
 0x4ad   :  { %5960 = vmatprep.mubr.msk.f32.mxu0 %vm6234_vm1, %v6233_v14 }
 0x4b0   :  { %5961 = vmatmul.mubr.msk.f32.gmra.mxu0 %vm77_vm0, %v7008_v18 }
 0x4b1   :  { %5998 = vmatprep.mubr.msk.f32.mxu0 %vm2973_vm2, %v3361_v0  ;;  %v3653_v0 = vld [vmem:[#allocation2 + $0x418] sm:$0xff] }
 0x55f   :  { %v5930_v53 = vpop.f32.mrf.mxu0  ;;  %v5942_v35 = vpop.f32.mrf.mxu1 }
 0x560   :  { %v3155_v3 = vadd.f32 %v5942_v35, %v5930_v53 }
 0x561   :  { %v3052_v58 = vpop.f32.mrf.mxu0  ;;  %v3149_v55 = vpop.f32.mrf.mxu1 }
 0x562   :  { %v3150_v22 = vadd.f32 %v3149_v55, %v3052_v58 }
 0x563   :  { %v5945_v7 = vpop.f32.mrf.mxu1 }
 0x564   :  { %v5933_v48 = vpop.f32.mrf.mxu0 }
 0x565   :  { %v3165_v19 = vadd.f32 %v5945_v7, %v5933_v48  ;;  %v3159_v28 = vpop.f32.mrf.mxu1  ;;  %v4566_v7 = vld [vmem:[%s7185_s3 + $0x8] ss:$0 sm:$0xff] }
 0x566   :  { %v3062_v41 = vpop.f32.mrf.mxu0 }
 0x567   :  { %v3160_v45 = vadd.f32 %v3159_v28, %v3062_v41  ;;  %v3924_v28 = vld [vmem:[#allocation4 + $0x248] sm:$0xff] }
 0x568   :  { %v3242_v29 = vpop.f32.mrf.mxu0 }
 0x56a   :  { %v5956_v34 = vpop.f32.mrf.mxu0 }
 0x56b   :  { %v3564_v34 = vld [vmem:[#allocation2 + $0x3e0] sm:$0xff] }
 0x56c   :  { %v3247_v38 = vpop.f32.mrf.mxu0 }
 0x56e   :  { %v5959_v24 = vpop.f32.mrf.mxu0 }
 0x570   :  { %v3252_v60 = vpop.f32.mrf.mxu0 }
 0x571   :  { %5963 = vmatprep.subr.mxu1 %v3252_v60 }
 0x572   :  { %v5962_v57 = vpop.f32.mrf.mxu0  ;;  %5964 = vmatpush3.msra.mxu1 %v3252_v60  ;;  %v3651_v60 = vld [vmem:[#allocation2 + $0x408] sm:$0xff] }
 0x573   :  { %5965 = vmatprep.subr.mxu1 %v3247_v38  ;;  %v3565_v57 = vld [vmem:[#allocation2 + $0x3e8] sm:$0xff] }
 0x574   :  { %5966 = vmatpush3.msra.mxu1 %v3247_v38 }
 0x575   :  { %5967 = vmatprep.subr.mxu1 %v3242_v29 }
 0x576   :  { %5968 = vmatpush3.msra.mxu1 %v3242_v29  ;;  %v3650_v29 = vld [vmem:[#allocation2 + $0x400] sm:$0xff] }
 0x577   :  { %5970 = vmatmul.mubr.msk.f32.vlgmr.msra.gmra.mxu1 %vm2973_vm2, %v3173_v40  ;;  %5975 = vmatprep.subr.mxu1 %v6233_v14  ;;  %v3652_v40 = vld [vmem:[#allocation2 + $0x410] sm:$0xff] }
 0x578   :  { %5976 = vmatpush3.msra.mxu1 %v3360_v33  ;;  %5972 = vmatprep.mubr.msk.f32.mxu1 %vm2973_vm2, %v3174_v39 }
 0x579   :  { %5977 = vmatprep.subr.mxu1 %v6233_v14 }
 0x57a   :  { %5978 = vmatpush3.msra.mxu1 %v3359_v2  ;;  %v3926_v2 = vld [vmem:[#allocation4 + $0x258] sm:$0xff] }
 0x57b   :  { %5973 = vmatmul.mubr.msk.f32.gmra.mxu1 %vm2973_vm2, %v3175_v44  ;;  %5979 = vmatprep.subr.mxu1 %v6233_v14  ;;  %v3566_v44 = vld [vmem:[#allocation2 + $0x3f0] sm:$0xff] }
 0x57c   :  { %5980 = vmatpush3.msra.mxu1 %v3358_v9  ;;  %5983 = vmatprep.mubr.msk.f32.mxu1 %vm6234_vm1, %v6233_v14  ;;  %v3925_v9 = vld [vmem:[#allocation4 + $0x250] sm:$0xff] }
 0x57d   :  { %5981 = vmatprep.subr.mxu1 %v6233_v14 }
 0x57e   :  { %5982 = vmatpush3.msra.mxu1 %v3357_v46  ;;  %v3567_v46 = vld [vmem:[#allocation2 + $0x3f8] sm:$0xff] }
 0x57f   :  { %5984 = vmatmul.mubr.msk.f32.vlgmr.msra.gmra.mxu1 %vm77_vm0, %v6988_v8  ;;  %6004 = vmatprep.subr.mxu1 %v6233_v14 }
 0x580   :  { %5986 = vmatprep.mubr.msk.f32.mxu1 %vm6234_vm1, %v6233_v14  ;;  %6005 = vmatpush3.msra.mxu1 %v3563_v49  ;;  %v4109_v49 = vld [vmem:[#allocation4 + $0x298] sm:$0xff] }
 0x581   :  { %6006 = vmatprep.subr.mxu1 %v6233_v14 }
 0x582   :  { %6007 = vmatpush3.msra.mxu1 %v3562_v26 }
 0x583   :  { %5987 = vmatmul.mubr.msk.f32.gmra.mxu1 %vm77_vm0, %v6998_v15  ;;  %6008 = vmatprep.subr.mxu1 %v6233_v14 }
 0x584   :  { %5989 = vmatprep.mubr.msk.f32.mxu1 %vm6234_vm1, %v6233_v14  ;;  %6009 = vmatpush3.msra.mxu1 %v3561_v52  ;;  %v3930_v52 = vld [vmem:[#allocation2 + $0x438] sm:$0xff] }
 0x585   :  { %6010 = vmatprep.subr.mxu1 %v6233_v14 }
 0x586   :  { %6011 = vmatpush3.msra.mxu1 %v3560_v31  ;;  %v4106_v31 = vld [vmem:[#allocation4 + $0x280] sm:$0xff] }
 0x587   :  { %5990 = vmatmul.mubr.msk.f32.gmra.mxu1 %vm77_vm0, %v7008_v18  ;;  %6012 = vmatprep.subr.mxu1 %v6233_v14 }
 0x588   :  { %6020 = vmatprep.mubr.msk.f32.mxu1 %vm6234_vm1, %v6233_v14  ;;  %6013 = vmatpush3.msra.mxu1 %v3559_v30  ;;  %v4104_v30 = vld [vmem:[#allocation4 + $0x270] sm:$0xff] }
 0x589   :  { %6014 = vmatprep.subr.mxu1 %v6233_v14 }
 0x58a   :  { %6015 = vmatpush3.msra.mxu1 %v3558_v56  ;;  %v4102_v56 = vld [vmem:[#allocation4 + $0x260] sm:$0xff] }
 0x58b   :  { %6016 = vmatprep.subr.mxu1 %v6233_v14 }
 0x58c   :  { %6017 = vmatpush3.msra.mxu1 %v3557_v54 }
 0x58d   :  { %6018 = vmatprep.subr.mxu1 %v6233_v14 }
 0x58e   :  { %6019 = vmatpush3.msra.mxu1 %v3556_v61 }
 0x637   :  { %v5971_v62 = vpop.f32.mrf.mxu1 }
 0x638   :  { %v7062_v10 = vadd.f32 %v5971_v62, %v3155_v3  ;;  %v3923_v62 = vld [vmem:[#allocation4 + $0x240] sm:$0xff] }
 0x639   :  { %v3334_v1 = vpop.f32.mrf.mxu1 }
 0x63a   :  { %v7064_v63 = vadd.f32 %v3334_v1, %v3150_v22  ;;  %v3921_v1 = vld [vmem:[#allocation4 + $0x230] sm:$0xff] }
 0x63b   :  { %v5974_v8 = vpop.f32.mrf.mxu1 }
 0x63c   :  { %v7066_v13 = vadd.f32 %v5974_v8, %v3165_v19  ;;  %v3919_v8 = vld [vmem:[#allocation4 + $0x220] sm:$0xff] }
 0x63d   :  { %v3344_v16 = vpop.f32.mrf.mxu1 }
 0x63e   :  { %v7068_v11 = vadd.f32 %v3344_v16, %v3160_v45  ;;  %v3927_v45 = vld [vmem:[#allocation2 + $0x420] sm:$0xff] }
 0x63f   :  { %v3431_v12 = vpop.f32.mrf.mxu1 }
 0x641   :  { %v5985_v43 = vpop.f32.mrf.mxu1 }
 0x643   :  { %v3436_v15 = vpop.f32.mrf.mxu1 }
 0x645   :  { %v5988_v18 = vpop.f32.mrf.mxu1 }
 0x647   :  { %v3441_v5 = vpop.f32.mrf.mxu1 }
 0x648   :  { %5992 = vmatprep.subr.mxu0 %v3441_v5 }
 0x649   :  { %v5991_v6 = vpop.f32.mrf.mxu1  ;;  %5993 = vmatpush3.msra.mxu0 %v3441_v5 }
 0x64a   :  { %5994 = vmatprep.subr.mxu0 %v3436_v15 }
 0x64b   :  { %5995 = vmatpush3.msra.mxu0 %v3436_v15 }
 0x64c   :  { %5996 = vmatprep.subr.mxu0 %v3431_v12 }
 0x64d   :  { %5997 = vmatpush3.msra.mxu0 %v3431_v12 }
 0x64e   :  { %5999 = vmatmul.mubr.msk.f32.vlgmr.msra.gmra.mxu0 %vm2973_vm2, %v3362_v42  ;;  %6023 = vmatprep.subr.mxu0 %v6233_v14 }
 0x64f   :  { %6001 = vmatprep.mubr.msk.f32.mxu0 %vm2973_vm2, %v3363_v21  ;;  %6024 = vmatpush3.msra.mxu0 %v3649_v50  ;;  %v3929_v50 = vld [vmem:[#allocation2 + $0x430] sm:$0xff] }
 0x650   :  { %6025 = vmatprep.subr.mxu0 %v6233_v14 }
 0x651   :  { %6026 = vmatpush3.msra.mxu0 %v3648_v25  ;;  %v4108_v25 = vld [vmem:[#allocation4 + $0x290] sm:$0xff] }
 0x652   :  { %6002 = vmatmul.mubr.msk.f32.gmra.mxu0 %vm2973_vm2, %v3364_v23  ;;  %6027 = vmatprep.subr.mxu0 %v6233_v14  ;;  %v3928_v23 = vld [vmem:[#allocation2 + $0x428] sm:$0xff] }
 0x653   :  { %6039 = vmatprep.mubr.msk.f32.mxu0 %vm6234_vm1, %v6233_v14  ;;  %6028 = vmatpush3.msra.mxu0 %v3647_v47  ;;  %v4107_v47 = vld [vmem:[#allocation4 + $0x288] sm:$0xff] }
 0x654   :  { %6029 = vmatprep.subr.mxu0 %v6233_v14 }
 0x655   :  { %6030 = vmatpush3.msra.mxu0 %v3646_v17  ;;  %v4105_v17 = vld [vmem:[#allocation4 + $0x278] sm:$0xff] }
 0x656   :  { %6031 = vmatprep.subr.mxu0 %v6233_v14 }
 0x657   :  { %6032 = vmatpush3.msra.mxu0 %v3645_v4  ;;  %v4103_v4 = vld [vmem:[#allocation4 + $0x268] sm:$0xff] }
 0x658   :  { %6033 = vmatprep.subr.mxu0 %v6233_v14 }
 0x659   :  { %6034 = vmatpush3.msra.mxu0 %v3644_v59  ;;  %v4110_v59 = vld [vmem:[#allocation2 + $0x440] sm:$0xff] }
 0x65a   :  { %6035 = vmatprep.subr.mxu0 %v6233_v14 }
 0x65b   :  { %6036 = vmatpush3.msra.mxu0 %v3643_v32 }
 0x65c   :  { %6037 = vmatprep.subr.mxu0 %v6233_v14 }
 0x65d   :  { %6038 = vmatpush3.msra.mxu0 %v3642_v36 }
 0x70e   :  { %v6000_v37 = vpop.f32.mrf.mxu0 }
 0x70f   :  { %v3543_v27 = vadd.f32 %v6000_v37, %v7062_v10  ;;  %v3922_v10 = vld [vmem:[#allocation4 + $0x238] sm:$0xff] }
 0x710   :  { %v3523_v20 = vpop.f32.mrf.mxu0 }
 0x711   :  { %v3542_v51 = vadd.f32 %v3523_v20, %v7064_v63  ;;  %v3920_v63 = vld [vmem:[#allocation4 + $0x228] sm:$0xff] }
 0x712   :  { %v6003_v53 = vpop.f32.mrf.mxu0 }
 0x713   :  { %v3546_v35 = vmax.f32 %v3542_v51, %v3543_v27  ;;  %v3545_v58 = vadd.f32 %v6003_v53, %v7066_v13 }
 0x714   :  { %v3533_v3 = vpop.f32.mrf.mxu0 }
 0x715   :  { %v3544_v55 = vadd.f32 %v3533_v3, %v7068_v11 }
 0x717   :  { %v3547_v22 = vmax.f32 %v3544_v55, %v3545_v58  ;;  %v4111_v58 = vld [vmem:[#allocation2 + $0x448] sm:$0xff]  ;;  %v4112_v55 = vld [vmem:[#allocation2 + $0x450] sm:$0xff] }
 0x719   :  { %v3548_v48 = vmax.f32 %v3546_v35, %v3547_v22  ;;  %v4310_v22 = vld [vmem:[#allocation4 + $0x318] sm:$0xff] }
 0x71b   :  { %v3554_v19 = vadd.f32 %v4566_v7, %v3548_v48  ;;  %v4309_v48 = vld [vmem:[#allocation4 + $0x310] sm:$0xff] }
 0x71d   :  { %v7097_v41 = vmax.f32 %v3554_v19, 0.0  ;;  %v4113_v19 = vld [vmem:[#allocation2 + $0x458] sm:$0xff] }
 0x71f   :  { %6021 = vmatmul.mubr.msk.f32.vlgmr.msra.gmra.mxu1 %vm3568_vm3, %v7097_v41  ;;  %6040 = vmatmul.mubr.msk.f32.vlgmr.msra.gmra.mxu0 %vm3568_vm3, %v7097_v41 }
 0x720   :  { %6044 = vmatprep.mubr.msk.f32.mxu1 %vm3724_vm4, %v3650_v29  ;;  %6052 = vmatprep.mubr.msk.f32.mxu0 %vm3724_vm4, %v3564_v34  ;;  %v4307_v29 = vld [vmem:[#allocation4 + $0x300] sm:$0xff]  ;;  %v4306_v34 = vld [vmem:[#allocation4 + $0x2f8] sm:$0xff] }
 0x7df   :  { %v3638_v38 = vpop.f32.mrf.mxu1  ;;  %v3720_v24 = vpop.f32.mrf.mxu0 }
 0x7e0   :  { %6042 = vmatprep.subr.mxu1 %v3720_v24  ;;  %6050 = vmatprep.subr.mxu0 %v3638_v38 }
 0x7e1   :  { %v6022_v33 = vpop.f32.mrf.mxu1  ;;  %v6041_v39 = vpop.f32.mrf.mxu0  ;;  %6043 = vmatpush3.msra.mxu1 %v3720_v24  ;;  %6051 = vmatpush3.msra.mxu0 %v3638_v38  ;;  %v4305_v38 = vld [vmem:[#allocation4 + $0x2f0] sm:$0xff]  ;;  %v4304_v24 = vld [vmem:[#allocation4 + $0x2e8] sm:$0xff] }
 0x7e2   :  { %6045 = vmatmul.mubr.msk.f32.vlgmr.msra.gmra.mxu1 %vm3724_vm4, %v3651_v60  ;;  %6053 = vmatmul.mubr.msk.f32.vlgmr.msra.gmra.mxu0 %vm3724_vm4, %v3565_v57  ;;  %v4303_v60 = vld [vmem:[#allocation4 + $0x2e0] sm:$0xff]  ;;  %v4302_v57 = vld [vmem:[#allocation4 + $0x2d8] sm:$0xff]  ;;  %v4300_v33 = vld [vmem:[#allocation4 + $0x2c8] sm:$0xff] }
 0x7e3   :  { %6058 = vmatprep.subr.mxu1 %v6233_v14  ;;  %6047 = vmatprep.mubr.msk.f32.mxu1 %vm3724_vm4, %v3652_v40  ;;  %v4301_v40 = vld [vmem:[#allocation4 + $0x2d0] sm:$0xff]  ;;  %v4299_v39 = vld [vmem:[#allocation4 + $0x2c0] sm:$0xff] }
 0x7e4   :  { %6059 = vmatpush3.msra.mxu1 %v3926_v2  ;;  %6055 = vmatprep.mubr.msk.f32.mxu0 %vm3724_vm4, %v3566_v44  ;;  %v4298_v2 = vld [vmem:[#allocation4 + $0x2b8] sm:$0xff]  ;;  %v4297_v44 = vld [vmem:[#allocation4 + $0x2b0] sm:$0xff] }
 0x7e5   :  { %6060 = vmatprep.subr.mxu1 %v6233_v14 }
 0x7e6   :  { %6061 = vmatpush3.msra.mxu1 %v3925_v9  ;;  %6056 = vmatmul.mubr.msk.f32.gmra.mxu0 %vm3724_vm4, %v3567_v46  ;;  %v4296_v9 = vld [vmem:[#allocation4 + $0x2a8] sm:$0xff]  ;;  %v4295_v46 = vld [vmem:[#allocation4 + $0x2a0] sm:$0xff] }
 0x7e7   :  { %6062 = vmatprep.subr.mxu1 %v6233_v14  ;;  %6048 = vmatmul.mubr.msk.f32.gmra.mxu1 %vm3724_vm4, %v3653_v0 }
 0x7e8   :  { %6063 = vmatpush3.msra.mxu1 %v3924_v28  ;;  %6074 = vmatprep.mubr.msk.f32.mxu1 %vm6234_vm1, %v6233_v14 }
 0x7e9   :  { %6064 = vmatprep.subr.mxu1 %v6233_v14  ;;  %6079 = vmatprep.mubr.msk.f32.mxu0 %vm3724_vm4, %v3927_v45 }
 0x7ea   :  { %6065 = vmatpush3.msra.mxu1 %v3923_v62 }
 0x7eb   :  { %6066 = vmatprep.subr.mxu1 %v6233_v14 }
 0x7ec   :  { %6067 = vmatpush3.msra.mxu1 %v3922_v10 }
 0x7ed   :  { %6068 = vmatprep.subr.mxu1 %v6233_v14 }
 0x7ee   :  { %6069 = vmatpush3.msra.mxu1 %v3921_v1 }
 0x7ef   :  { %6070 = vmatprep.subr.mxu1 %v6233_v14 }
 0x7f0   :  { %6071 = vmatpush3.msra.mxu1 %v3920_v63 }
 0x7f1   :  { %6072 = vmatprep.subr.mxu1 %v6233_v14 }
 0x7f2   :  { %6073 = vmatpush3.msra.mxu1 %v3919_v8 }
 0x7f3   :  { %6075 = vmatmul.mubr.msk.f32.vlgmr.msra.gmra.mxu1 %vm3568_vm3, %v7097_v41 }
 0x7f4   :  { %6106 = vmatprep.mubr.msk.f32.mxu1 %vm3724_vm4, %v4110_v59 }
 0x8a2   :  { %v6046_v13 = vpop.f32.mrf.mxu1  ;;  %v6054_v16 = vpop.f32.mrf.mxu0 }
 0x8a3   :  { %v3906_v11 = vadd.f32 %v6054_v16, %v6046_v13 }
 0x8a4   :  { %v3803_v12 = vpop.f32.mrf.mxu1  ;;  %v3900_v43 = vpop.f32.mrf.mxu0 }
 0x8a5   :  { %v3901_v15 = vadd.f32 %v3900_v43, %v3803_v12 }
 0x8a6   :  { %v6057_v5 = vpop.f32.mrf.mxu0 }
 0x8a7   :  { %v6049_v18 = vpop.f32.mrf.mxu1 }
 0x8a8   :  { %v3916_v6 = vadd.f32 %v6057_v5, %v6049_v18  ;;  %v3910_v54 = vpop.f32.mrf.mxu0 }
 0x8a9   :  { %v3813_v42 = vpop.f32.mrf.mxu1 }
 0x8aa   :  { %v3911_v27 = vadd.f32 %v3910_v54, %v3813_v42 }
 0x8b3   :  { %v3997_v21 = vpop.f32.mrf.mxu1 }
 0x8b4   :  { %6077 = vmatprep.subr.mxu0 %v3997_v21 }
 0x8b5   :  { %v6076_v26 = vpop.f32.mrf.mxu1  ;;  %6078 = vmatpush3.msra.mxu0 %v3997_v21 }
 0x8b6   :  { %6080 = vmatmul.mubr.msk.f32.vlgmr.msra.gmra.mxu0 %vm3724_vm4, %v3928_v23  ;;  %6085 = vmatprep.subr.mxu0 %v6233_v14 }
 0x8b7   :  { %6086 = vmatpush3.msra.mxu0 %v4109_v49  ;;  %6082 = vmatprep.mubr.msk.f32.mxu0 %vm3724_vm4, %v3929_v50 }
 0x8b8   :  { %6087 = vmatprep.subr.mxu0 %v6233_v14 }
 0x8b9   :  { %6088 = vmatpush3.msra.mxu0 %v4108_v25 }
 0x8ba   :  { %6083 = vmatmul.mubr.msk.f32.gmra.mxu0 %vm3724_vm4, %v3930_v52  ;;  %6089 = vmatprep.subr.mxu0 %v6233_v14 }
 0x8bb   :  { %6090 = vmatpush3.msra.mxu0 %v4107_v47  ;;  %6101 = vmatprep.mubr.msk.f32.mxu0 %vm6234_vm1, %v6233_v14 }
 0x8bc   :  { %6091 = vmatprep.subr.mxu0 %v6233_v14 }
 0x8bd   :  { %6092 = vmatpush3.msra.mxu0 %v4106_v31 }
 0x8be   :  { %6093 = vmatprep.subr.mxu0 %v6233_v14 }
 0x8bf   :  { %6094 = vmatpush3.msra.mxu0 %v4105_v17 }
 0x8c0   :  { %6095 = vmatprep.subr.mxu0 %v6233_v14 }
 0x8c1   :  { %6096 = vmatpush3.msra.mxu0 %v4104_v30 }
 0x8c2   :  { %6097 = vmatprep.subr.mxu0 %v6233_v14 }
 0x8c3   :  { %6098 = vmatpush3.msra.mxu0 %v4103_v4 }
 0x8c4   :  { %6099 = vmatprep.subr.mxu0 %v6233_v14 }
 0x8c5   :  { %6100 = vmatpush3.msra.mxu0 %v4102_v56 }
 0x8c6   :  { %6102 = vmatmul.mubr.msk.f32.vlgmr.msra.gmra.mxu0 %vm3568_vm3, %v7097_v41  ;;  %v4308_v41 = vld [vmem:[#allocation4 + $0x308] sm:$0xff] }
 0x976   :  { %v6081_v32 = vpop.f32.mrf.mxu0 }
 0x977   :  { %v7140_v61 = vadd.f32 %v6081_v32, %v3906_v11 }
 0x978   :  { %v4079_v36 = vpop.f32.mrf.mxu0 }
 0x979   :  { %v7142_v37 = vadd.f32 %v4079_v36, %v3901_v15  ;;  %v4588_v15 = vld [vmem:[%s7185_s3 + $0x18] ss:$0 sm:$0xff] }
 0x97a   :  { %v6084_v20 = vpop.f32.mrf.mxu0 }
 0x97b   :  { %v7144_v51 = vadd.f32 %v6084_v20, %v3916_v6 }
 0x97c   :  { %v4089_v53 = vpop.f32.mrf.mxu0 }
 0x97d   :  { %v7146_v35 = vadd.f32 %v4089_v53, %v3911_v27 }
 0x986   :  { %v4180_v3 = vpop.f32.mrf.mxu0 }
 0x987   :  { %6104 = vmatprep.subr.mxu1 %v4180_v3 }
 0x988   :  { %v6103_v7 = vpop.f32.mrf.mxu0  ;;  %6105 = vmatpush3.msra.mxu1 %v4180_v3 }
 0x989   :  { %6107 = vmatmul.mubr.msk.f32.vlgmr.msra.gmra.mxu1 %vm3724_vm4, %v4111_v58  ;;  %6112 = vmatprep.subr.mxu1 %v6233_v14 }
 0x98a   :  { %6109 = vmatprep.mubr.msk.f32.mxu1 %vm3724_vm4, %v4112_v55  ;;  %6113 = vmatpush3.msra.mxu1 %v4310_v22 }
 0x98b   :  { %6114 = vmatprep.subr.mxu1 %v6233_v14 }
 0x98c   :  { %6115 = vmatpush3.msra.mxu1 %v4309_v48 }
 0x98d   :  { %6110 = vmatmul.mubr.msk.f32.gmra.mxu1 %vm3724_vm4, %v4113_v19  ;;  %6116 = vmatprep.subr.mxu1 %v6233_v14 }
 0x98e   :  { %6117 = vmatpush3.msra.mxu1 %v4308_v41  ;;  %6144 = vmatprep.mubr.msk.f32.mxu1 %vm6234_vm1, %v6233_v14 }
 0x98f   :  { %6118 = vmatprep.subr.mxu1 %v6233_v14 }
 0x990   :  { %6119 = vmatpush3.msra.mxu1 %v4307_v29 }
 0x991   :  { %6120 = vmatprep.subr.mxu1 %v6233_v14 }
 0x992   :  { %6121 = vmatpush3.msra.mxu1 %v4306_v34 }
 0x993   :  { %6122 = vmatprep.subr.mxu1 %v6233_v14 }
 0x994   :  { %6123 = vmatpush3.msra.mxu1 %v4305_v38 }
 0x995   :  { %6124 = vmatprep.subr.mxu1 %v6233_v14 }
 0x996   :  { %6125 = vmatpush3.msra.mxu1 %v4304_v24 }
 0x997   :  { %6126 = vmatprep.subr.mxu1 %v6233_v14 }
 0x998   :  { %6127 = vmatpush3.msra.mxu1 %v4303_v60 }
 0x999   :  { %6128 = vmatprep.subr.mxu1 %v6233_v14 }
 0x99a   :  { %6129 = vmatpush3.msra.mxu1 %v4302_v57 }
 0x99b   :  { %6130 = vmatprep.subr.mxu1 %v6233_v14 }
 0x99c   :  { %6131 = vmatpush3.msra.mxu1 %v4301_v40 }
 0x99d   :  { %6132 = vmatprep.subr.mxu1 %v6233_v14 }
 0x99e   :  { %6133 = vmatpush3.msra.mxu1 %v4300_v33 }
 0x99f   :  { %6134 = vmatprep.subr.mxu1 %v6233_v14 }
 0x9a0   :  { %6135 = vmatpush3.msra.mxu1 %v4299_v39 }
 0x9a1   :  { %6136 = vmatprep.subr.mxu1 %v6233_v14 }
 0x9a2   :  { %6137 = vmatpush3.msra.mxu1 %v4298_v2 }
 0x9a3   :  { %6138 = vmatprep.subr.mxu1 %v6233_v14 }
 0x9a4   :  { %6139 = vmatpush3.msra.mxu1 %v4297_v44 }
 0x9a5   :  { %6140 = vmatprep.subr.mxu1 %v6233_v14 }
 0x9a6   :  { %6141 = vmatpush3.msra.mxu1 %v4296_v9 }
 0x9a7   :  { %6142 = vmatprep.subr.mxu1 %v6233_v14  ;;  %v4587_v14 = vld [vmem:[%s7185_s3 + $0x10] ss:$0 sm:$0xff] }
 0x9a8   :  { %6143 = vmatpush3.msra.mxu1 %v4295_v46 }
 0xa49   :  { %v6108_v0 = vpop.f32.mrf.mxu1 }
 0xa4a   :  { %v4282_v62 = vadd.f32 %v6108_v0, %v7140_v61 }
 0xa4b   :  { %v4262_v28 = vpop.f32.mrf.mxu1 }
 0xa4c   :  { %v4281_v10 = vadd.f32 %v4262_v28, %v7142_v37 }
 0xa4d   :  { %v6111_v1 = vpop.f32.mrf.mxu1 }
 0xa4e   :  { %v4285_v63 = vmax.f32 %v4281_v10, %v4282_v62  ;;  %v4284_v45 = vadd.f32 %v6111_v1, %v7144_v51 }
 0xa4f   :  { %v4272_v8 = vpop.f32.mrf.mxu1 }
 0xa50   :  { %v4283_v13 = vadd.f32 %v4272_v8, %v7146_v35 }
 0xa52   :  { %v4286_v16 = vmax.f32 %v4283_v13, %v4284_v45 }
 0xa54   :  { %v4287_v11 = vmax.f32 %v4285_v63, %v4286_v16 }
 0xa56   :  { %v4293_v12 = vadd.f32 %v4587_v14, %v4287_v11 }
 0xa58   :  { %v4294_v43 = vmax.f32 %v4293_v12, 0.0 }
 0xa5a   :  { %6145 = vmatmul.mubr.f32.vlgmr.msra.gmra.mxu1 %v4294_v43 }
 0xb1a   :  { %v4382_v18 = vpop.f32.mrf.mxu1 }
 0xb1b   :  { %v4383_v5 = vadd.f32 %v4588_v15, %v4382_v18 }
 0xb1c   :  { %v6146_v6 = vpop.f32.mrf.mxu1 }
 0xb1d   :  { %4386 = vst [vmem:[%s7186_s4] sm:$0xff] %v4383_v5 }
 0xb1e   :  { %4391 = vsyncpa [#allocation3], 1 }
 0xb1f   :  { %4392 = vsyncpa [#allocation5], 1 }

</bundles_post_ra>
